<compile_context>
chip_gen: v5e
topology: v5e:2x2
jax: 0.10.0
libtpu: 0.0.40
codegen_flags: <defaults>
</compile_context>

<pallas_src>
import functools

import jax
import jax.numpy as jnp
from jax.experimental import pallas as pl
from jax.experimental.pallas import tpu as pltpu

BN_EPS = 1e-5
LANES = 128


# ------------------------------- Pallas kernel -------------------------------

def _sepconv_bn_kernel(x_ref, w_ref, shift_ref, o_ref, slab_ref,
                       *, K, pad, TH, nH):
    # x_ref:     (1, H, W, C)        whole image for this batch element (NHWC)
    # w_ref:     (K*K, 1, 1, C)      depthwise taps with BN scale pre-folded
    # shift_ref: (1, 1, C)           folded BN shift (conv bias folded in)
    # o_ref:     (1, TH, W, C)       one H-tile of the output
    # slab_ref:  (TH+2p, W+2p, C)    VMEM halo slab for this H-tile
    _, _, W, C = o_ref.shape
    HS = TH + 2 * pad                       # slab rows
    hb = pl.program_id(1)
    h0 = hb * TH

    # ---- build the halo slab: zero only the halo, copy the interior --------
    zstrip = jnp.zeros((HS, pad, C), jnp.float32)
    slab_ref[:, :pad, :] = zstrip           # left pad columns
    slab_ref[:, pad + W:, :] = zstrip       # right pad columns

    zrows = jnp.zeros((pad, W, C), jnp.float32)
    if nH == 1:
        # Single H-tile: both the top and bottom halos are zero.
        slab_ref[:pad, pad:pad + W, :] = zrows
        slab_ref[pad:pad + TH, pad:pad + W, :] = x_ref[0, :, :, :]
        slab_ref[pad + TH:, pad:pad + W, :] = zrows
    else:
        @pl.when(hb == 0)
        def _():
            slab_ref[:pad, pad:pad + W, :] = zrows
            slab_ref[pad:, pad:pad + W, :] = x_ref[0, pl.ds(0, TH + pad), :, :]

        @pl.when(hb == nH - 1)
        def _():
            slab_ref[:TH + pad, pad:pad + W, :] = (
                x_ref[0, pl.ds(h0 - pad, TH + pad), :, :])
            slab_ref[TH + pad:, pad:pad + W, :] = zrows

        @pl.when(jnp.logical_and(hb > 0, hb < nH - 1))
        def _():
            slab_ref[:, pad:pad + W, :] = x_ref[0, pl.ds(h0 - pad, HS), :, :]

    # ---- 5x5 depthwise taps: one kw-shifted slab reused across all kh ------
    # Weight loads hoisted once per kernel invocation (BN scale pre-folded).
    w = [w_ref[t] for t in range(K * K)]            # each (1, 1, C)

    # Initialize the accumulator with the BN shift (absorbs the epilogue add).
    acc = jnp.broadcast_to(shift_ref[...], (TH, W, C)).astype(jnp.float32)
    for kw in range(K):
        slab_kw = slab_ref[:, kw:kw + W, :]         # one sublane shift per kw
        for kh in range(K):
            # kh offset is a free leading-dim slice of the loaded slab.
            acc = acc + slab_kw[kh:kh + TH] * w[kh * K + kw]

    # Lane-dense unmasked store of the output tile.
    o_ref[0] = acc.astype(o_ref.dtype)


# ------------------------------ kernel wrapper --------------------------------

def sepconv_bn_nhwc(x, w_scaled, shift, *, TH):
    """Fused depthwise KxK conv (stride 1, 'same' pad, groups=C) + folded BN.

    x: (N, H, W, C) f32 with H a multiple of TH and C a multiple of 128.
    w_scaled: (K, K, C) taps with the BN scale already folded in.
    shift: (C,).
    """
    N, H, W, C = x.shape
    K = w_scaled.shape[0]
    pad = (K - 1) // 2
    nH = H // TH
    HS = TH + 2 * pad
    Wp = W + 2 * pad

    kernel = functools.partial(_sepconv_bn_kernel, K=K, pad=pad, TH=TH, nH=nH)

    # Explicit scoped-VMEM budget (v5e default is only 16 MiB).
    x_bytes = H * W * C * 4
    o_bytes = TH * W * C * 4
    slab_bytes = HS * ((Wp + 7) // 8 * 8) * C * 4
    w_bytes = K * K * C * 4
    est = 2 * x_bytes + 2 * o_bytes + slab_bytes + w_bytes + (4 << 20)
    vmem_limit = int(min(60 << 20, max(32 << 20, est)))

    return pl.pallas_call(
        kernel,
        out_shape=jax.ShapeDtypeStruct((N, H, W, C), jnp.float32),
        grid=(N, nH),
        in_specs=[
            # Whole image per batch element; block index is independent of the
            # H-tile axis, so it is DMA'd once per n and reused across tiles.
            pl.BlockSpec((1, H, W, C), lambda n, h: (n, 0, 0, 0)),
            pl.BlockSpec((K * K, 1, 1, C), lambda n, h: (0, 0, 0, 0)),
            pl.BlockSpec((1, 1, C), lambda n, h: (0, 0, 0)),
        ],
        out_specs=pl.BlockSpec((1, TH, W, C), lambda n, h: (n, h, 0, 0)),
        scratch_shapes=[pltpu.VMEM((HS, Wp, C), jnp.float32)],
        compiler_params=pltpu.CompilerParams(
            dimension_semantics=("parallel", "parallel"),
            vmem_limit_bytes=vmem_limit),
    )(x, w_scaled.reshape(K * K, 1, 1, C), shift.reshape(1, 1, C))


def sepconv55_op(x_nchw, params):
    """PyTorch SepConv55Op.forward: Conv2d(C, C, 5, pad=2, groups=C) + BN."""
    w, scale, shift = params["w"], params["scale"], params["shift"]
    N, C, H, W = x_nchw.shape
    K = w.shape[0]

    # TODO(synk): in a full network keep the surrounding graph NHWC to avoid
    #             these layout transposes (they are whole-tensor HBM passes).
    x = jnp.transpose(x_nchw, (0, 2, 3, 1))          # NCHW -> NHWC (C in lanes)

    # Fold the BN scale into the depthwise weights (kernel only adds `shift`).
    w_scaled = w * scale[None, None, :]

    cpad = (-C) % LANES                              # keep the lane dim dense
    if cpad:
        x = jnp.pad(x, ((0, 0), (0, 0), (0, 0), (0, cpad)))
        w_scaled = jnp.pad(w_scaled, ((0, 0), (0, 0), (0, cpad)))
        shift = jnp.pad(shift, (0, cpad))

    TH = min(8, H)                                   # rows per output tile
    hpad = (-H) % TH                                 # ragged H -> zero-pad rows
    if hpad:
        x = jnp.pad(x, ((0, 0), (0, hpad), (0, 0), (0, 0)))

    y = sepconv_bn_nhwc(x, w_scaled, shift, TH=TH)

    if hpad:
        y = y[:, :H]
    if cpad:
        y = y[..., :C]
    return jnp.transpose(y, (0, 3, 1, 2))            # NHWC -> NCHW


# ------------------------- deterministic parameter init ----------------------

def make_sepconv55_params(key, C, K=5):
    ks = jax.random.split(key, 6)
    w = 0.1 * jax.random.normal(ks[0], (K, K, C), jnp.float32)   # depthwise taps
    b = 0.1 * jax.random.normal(ks[1], (C,), jnp.float32)        # conv bias
    gamma = 1.0 + 0.1 * jax.random.normal(ks[2], (C,), jnp.float32)
    beta = 0.1 * jax.random.normal(ks[3], (C,), jnp.float32)
    mean = 0.1 * jax.random.normal(ks[4], (C,), jnp.float32)
    var = 1.0 + 0.1 * jnp.abs(jax.random.normal(ks[5], (C,), jnp.float32))
    # Fold BatchNorm (inference semantics) + conv bias into scale/shift.
    scale = gamma / jnp.sqrt(var + BN_EPS)
    shift = beta + scale * (b - mean)
    return {"w": w, "scale": scale, "shift": shift}


# ------------------------------ pure-JAX reference ----------------------------

def sepconv55_ref(x_nchw, params):
    C = x_nchw.shape[1]
    K = params["w"].shape[0]
    p = (K - 1) // 2
    w_oihw = jnp.transpose(params["w"], (2, 0, 1))[:, None, :, :]   # (C,1,K,K)
    y = jax.lax.conv_general_dilated(
        x_nchw, w_oihw, window_strides=(1, 1), padding=((p, p), (p, p)),
        feature_group_count=C, dimension_numbers=("NCHW", "OIHW", "NCHW"))
    return (y * params["scale"].reshape(1, C, 1, 1)
            + params["shift"].reshape(1, C, 1, 1))


# ----------------------------------- main ------------------------------------

if __name__ == "__main__":
    key = jax.random.PRNGKey(0)
    # C chosen lane-dense (128) per the performance review.
    N, C, H, W = 2, 128, 16, 16
    kx, kp = jax.random.split(key)

    x_nchw = jax.random.normal(kx, (N, C, H, W), jnp.float32)
    params = make_sepconv55_params(kp, C)

    out = sepconv55_op(x_nchw, params)
    out = jax.block_until_ready(out)

    assert out.shape == (N, C, H, W)
    assert bool(jnp.all(jnp.isfinite(out)))

    ref = sepconv55_ref(x_nchw, params)
    max_err = float(jnp.max(jnp.abs(out - ref)))
    assert max_err < 2e-3, f"mismatch vs lax reference: max_err={max_err}"

    print("KERNEL_OK")
</pallas_src>

<mosaic_0001>
module attributes {stable_mosaic.version = 11 : i64} {
  func.func @_sepconv_bn_kernel(%arg0: i32, %arg1: i32, %arg2: memref<1x16x16x128xf32, #tpu.memory_space<vmem>>, %arg3: memref<25x1x1x128xf32, #tpu.memory_space<vmem>>, %arg4: memref<1x1x128xf32, #tpu.memory_space<vmem>>, %arg5: memref<1x8x16x128xf32, #tpu.memory_space<vmem>>, %arg6: memref<12x20x128xf32, #tpu.memory_space<vmem>>) attributes {dimension_semantics = [#tpu.dimension_semantics<parallel>, #tpu.dimension_semantics<parallel>], iteration_bounds = array<i64: 2, 2>, scalar_prefetch = 0 : i64, scratch_operands = 1 : i64, tpu.core_type = #tpu.core_type<tc>, window_params = [{transform_indices = @transform_0, window_bounds = array<i64: 1, 16, 16, 128>}, {pipeline_mode = #tpu.pipeline_mode<synchronous>, transform_indices = @transform_1, window_bounds = array<i64: 25, 1, 1, 128>}, {pipeline_mode = #tpu.pipeline_mode<synchronous>, transform_indices = @transform_2, window_bounds = array<i64: 1, 1, 128>}, {transform_indices = @transform_3, window_bounds = array<i64: 1, 8, 16, 128>}]} {
    %c8_i32 = arith.constant 8 : i32
    %0 = arith.muli %arg1, %c8_i32 : i32
    %cst = arith.constant 0.000000e+00 : f32
    %1 = vector.broadcast %cst : f32 to vector<12x2x128xf32>
    %c0 = arith.constant 0 : index
    %c0_0 = arith.constant 0 : index
    %c0_1 = arith.constant 0 : index
    %2 = vector.load %arg6[%c0, %c0_0, %c0_1] : memref<12x20x128xf32, #tpu.memory_space<vmem>>, vector<12x2x128xf32>
    tpu.vector_store %arg6[%c0, %c0_0, %c0_1], %1 {strides = array<i32>} : memref<12x20x128xf32, #tpu.memory_space<vmem>>, vector<12x2x128xf32>,
    %c0_2 = arith.constant 0 : index
    %c18 = arith.constant 18 : index
    %c0_3 = arith.constant 0 : index
    %3 = vector.load %arg6[%c0_2, %c18, %c0_3] : memref<12x20x128xf32, #tpu.memory_space<vmem>>, vector<12x2x128xf32>
    tpu.vector_store %arg6[%c0_2, %c18, %c0_3], %1 {strides = array<i32>} : memref<12x20x128xf32, #tpu.memory_space<vmem>>, vector<12x2x128xf32>,
    %cst_4 = arith.constant 0.000000e+00 : f32
    %4 = vector.broadcast %cst_4 : f32 to vector<2x16x128xf32>
    %c0_i32 = arith.constant 0 : i32
    %5 = arith.cmpi eq, %arg1, %c0_i32 : i32
    %6 = arith.extui %5 : i1 to i32
    %c0_i32_5 = arith.constant 0 : i32
    %7 = arith.cmpi ne, %6, %c0_i32_5 : i32
    scf.if %7 {
      %c0_109 = arith.constant 0 : index
      %c2_110 = arith.constant 2 : index
      %c0_111 = arith.constant 0 : index
      %177 = vector.load %arg6[%c0_109, %c2_110, %c0_111] : memref<12x20x128xf32, #tpu.memory_space<vmem>>, vector<2x16x128xf32>
      tpu.vector_store %arg6[%c0_109, %c2_110, %c0_111], %4 {strides = array<i32>} : memref<12x20x128xf32, #tpu.memory_space<vmem>>, vector<2x16x128xf32>,
      %c0_112 = arith.constant 0 : index
      %c0_113 = arith.constant 0 : index
      %c0_114 = arith.constant 0 : index
      %c0_115 = arith.constant 0 : index
      %178 = vector.load %arg2[%c0_112, %c0_113, %c0_114, %c0_115] : memref<1x16x16x128xf32, #tpu.memory_space<vmem>>, vector<1x10x16x128xf32>
      %179 = vector.shape_cast %178 : vector<1x10x16x128xf32> to vector<10x16x128xf32>
      %c2_116 = arith.constant 2 : index
      %c2_117 = arith.constant 2 : index
      %c0_118 = arith.constant 0 : index
      %180 = vector.load %arg6[%c2_116, %c2_117, %c0_118] : memref<12x20x128xf32, #tpu.memory_space<vmem>>, vector<10x16x128xf32>
      tpu.vector_store %arg6[%c2_116, %c2_117, %c0_118], %179 {strides = array<i32>} : memref<12x20x128xf32, #tpu.memory_space<vmem>>, vector<10x16x128xf32>,
    } else {
    }
    %c1_i32 = arith.constant 1 : i32
    %8 = arith.cmpi eq, %arg1, %c1_i32 : i32
    %9 = arith.extui %8 : i1 to i32
    %c0_i32_6 = arith.constant 0 : i32
    %10 = arith.cmpi ne, %9, %c0_i32_6 : i32
    scf.if %10 {
      %c2_i32 = arith.constant 2 : i32
      %177 = arith.subi %0, %c2_i32 : i32
      %c0_109 = arith.constant 0 : index
      %178 = arith.index_cast %177 : i32 to index
      %c0_110 = arith.constant 0 : index
      %c0_111 = arith.constant 0 : index
      %179 = vector.load %arg2[%c0_109, %178, %c0_110, %c0_111] : memref<1x16x16x128xf32, #tpu.memory_space<vmem>>, vector<1x10x16x128xf32>
      %180 = vector.shape_cast %179 : vector<1x10x16x128xf32> to vector<10x16x128xf32>
      %c0_112 = arith.constant 0 : index
      %c2_113 = arith.constant 2 : index
      %c0_114 = arith.constant 0 : index
      %181 = vector.load %arg6[%c0_112, %c2_113, %c0_114] : memref<12x20x128xf32, #tpu.memory_space<vmem>>, vector<10x16x128xf32>
      tpu.vector_store %arg6[%c0_112, %c2_113, %c0_114], %180 {strides = array<i32>} : memref<12x20x128xf32, #tpu.memory_space<vmem>>, vector<10x16x128xf32>,
      %c10_115 = arith.constant 10 : index
      %c2_116 = arith.constant 2 : index
      %c0_117 = arith.constant 0 : index
      %182 = vector.load %arg6[%c10_115, %c2_116, %c0_117] : memref<12x20x128xf32, #tpu.memory_space<vmem>>, vector<2x16x128xf32>
      tpu.vector_store %arg6[%c10_115, %c2_116, %c0_117], %4 {strides = array<i32>} : memref<12x20x128xf32, #tpu.memory_space<vmem>>, vector<2x16x128xf32>,
    } else {
    }
    %c0_i32_7 = arith.constant 0 : i32
    %11 = arith.cmpi sgt, %arg1, %c0_i32_7 : i32
    %c1_i32_8 = arith.constant 1 : i32
    %12 = arith.cmpi slt, %arg1, %c1_i32_8 : i32
    %13 = arith.andi %11, %12 : i1
    %14 = arith.extui %13 : i1 to i32
    %c0_i32_9 = arith.constant 0 : i32
    %15 = arith.cmpi ne, %14, %c0_i32_9 : i32
    scf.if %15 {
      %c2_i32 = arith.constant 2 : i32
      %177 = arith.subi %0, %c2_i32 : i32
      %c0_109 = arith.constant 0 : index
      %178 = arith.index_cast %177 : i32 to index
      %c0_110 = arith.constant 0 : index
      %c0_111 = arith.constant 0 : index
      %179 = vector.load %arg2[%c0_109, %178, %c0_110, %c0_111] : memref<1x16x16x128xf32, #tpu.memory_space<vmem>>, vector<1x12x16x128xf32>
      %180 = vector.shape_cast %179 : vector<1x12x16x128xf32> to vector<12x16x128xf32>
      %c0_112 = arith.constant 0 : index
      %c2_113 = arith.constant 2 : index
      %c0_114 = arith.constant 0 : index
      %181 = vector.load %arg6[%c0_112, %c2_113, %c0_114] : memref<12x20x128xf32, #tpu.memory_space<vmem>>, vector<12x16x128xf32>
      tpu.vector_store %arg6[%c0_112, %c2_113, %c0_114], %180 {strides = array<i32>} : memref<12x20x128xf32, #tpu.memory_space<vmem>>, vector<12x16x128xf32>,
    } else {
    }
    %c0_10 = arith.constant 0 : index
    %c0_11 = arith.constant 0 : index
    %c0_12 = arith.constant 0 : index
    %c0_13 = arith.constant 0 : index
    %16 = vector.load %arg3[%c0_10, %c0_11, %c0_12, %c0_13] : memref<25x1x1x128xf32, #tpu.memory_space<vmem>>, vector<1x1x1x128xf32>
    %17 = vector.shape_cast %16 : vector<1x1x1x128xf32> to vector<1x1x128xf32>
    %c1 = arith.constant 1 : index
    %c0_14 = arith.constant 0 : index
    %c0_15 = arith.constant 0 : index
    %c0_16 = arith.constant 0 : index
    %18 = vector.load %arg3[%c1, %c0_14, %c0_15, %c0_16] : memref<25x1x1x128xf32, #tpu.memory_space<vmem>>, vector<1x1x1x128xf32>
    %19 = vector.shape_cast %18 : vector<1x1x1x128xf32> to vector<1x1x128xf32>
    %c2 = arith.constant 2 : index
    %c0_17 = arith.constant 0 : index
    %c0_18 = arith.constant 0 : index
    %c0_19 = arith.constant 0 : index
    %20 = vector.load %arg3[%c2, %c0_17, %c0_18, %c0_19] : memref<25x1x1x128xf32, #tpu.memory_space<vmem>>, vector<1x1x1x128xf32>
    %21 = vector.shape_cast %20 : vector<1x1x1x128xf32> to vector<1x1x128xf32>
    %c3 = arith.constant 3 : index
    %c0_20 = arith.constant 0 : index
    %c0_21 = arith.constant 0 : index
    %c0_22 = arith.constant 0 : index
    %22 = vector.load %arg3[%c3, %c0_20, %c0_21, %c0_22] : memref<25x1x1x128xf32, #tpu.memory_space<vmem>>, vector<1x1x1x128xf32>
    %23 = vector.shape_cast %22 : vector<1x1x1x128xf32> to vector<1x1x128xf32>
    %c4 = arith.constant 4 : index
    %c0_23 = arith.constant 0 : index
    %c0_24 = arith.constant 0 : index
    %c0_25 = arith.constant 0 : index
    %24 = vector.load %arg3[%c4, %c0_23, %c0_24, %c0_25] : memref<25x1x1x128xf32, #tpu.memory_space<vmem>>, vector<1x1x1x128xf32>
    %25 = vector.shape_cast %24 : vector<1x1x1x128xf32> to vector<1x1x128xf32>
    %c5 = arith.constant 5 : index
    %c0_26 = arith.constant 0 : index
    %c0_27 = arith.constant 0 : index
    %c0_28 = arith.constant 0 : index
    %26 = vector.load %arg3[%c5, %c0_26, %c0_27, %c0_28] : memref<25x1x1x128xf32, #tpu.memory_space<vmem>>, vector<1x1x1x128xf32>
    %27 = vector.shape_cast %26 : vector<1x1x1x128xf32> to vector<1x1x128xf32>
    %c6 = arith.constant 6 : index
    %c0_29 = arith.constant 0 : index
    %c0_30 = arith.constant 0 : index
    %c0_31 = arith.constant 0 : index
    %28 = vector.load %arg3[%c6, %c0_29, %c0_30, %c0_31] : memref<25x1x1x128xf32, #tpu.memory_space<vmem>>, vector<1x1x1x128xf32>
    %29 = vector.shape_cast %28 : vector<1x1x1x128xf32> to vector<1x1x128xf32>
    %c7 = arith.constant 7 : index
    %c0_32 = arith.constant 0 : index
    %c0_33 = arith.constant 0 : index
    %c0_34 = arith.constant 0 : index
    %30 = vector.load %arg3[%c7, %c0_32, %c0_33, %c0_34] : memref<25x1x1x128xf32, #tpu.memory_space<vmem>>, vector<1x1x1x128xf32>
    %31 = vector.shape_cast %30 : vector<1x1x1x128xf32> to vector<1x1x128xf32>
    %c8 = arith.constant 8 : index
    %c0_35 = arith.constant 0 : index
    %c0_36 = arith.constant 0 : index
    %c0_37 = arith.constant 0 : index
    %32 = vector.load %arg3[%c8, %c0_35, %c0_36, %c0_37] : memref<25x1x1x128xf32, #tpu.memory_space<vmem>>, vector<1x1x1x128xf32>
    %33 = vector.shape_cast %32 : vector<1x1x1x128xf32> to vector<1x1x128xf32>
    %c9 = arith.constant 9 : index
    %c0_38 = arith.constant 0 : index
    %c0_39 = arith.constant 0 : index
    %c0_40 = arith.constant 0 : index
    %34 = vector.load %arg3[%c9, %c0_38, %c0_39, %c0_40] : memref<25x1x1x128xf32, #tpu.memory_space<vmem>>, vector<1x1x1x128xf32>
    %35 = vector.shape_cast %34 : vector<1x1x1x128xf32> to vector<1x1x128xf32>
    %c10 = arith.constant 10 : index
    %c0_41 = arith.constant 0 : index
    %c0_42 = arith.constant 0 : index
    %c0_43 = arith.constant 0 : index
    %36 = vector.load %arg3[%c10, %c0_41, %c0_42, %c0_43] : memref<25x1x1x128xf32, #tpu.memory_space<vmem>>, vector<1x1x1x128xf32>
    %37 = vector.shape_cast %36 : vector<1x1x1x128xf32> to vector<1x1x128xf32>
    %c11 = arith.constant 11 : index
    %c0_44 = arith.constant 0 : index
    %c0_45 = arith.constant 0 : index
    %c0_46 = arith.constant 0 : index
    %38 = vector.load %arg3[%c11, %c0_44, %c0_45, %c0_46] : memref<25x1x1x128xf32, #tpu.memory_space<vmem>>, vector<1x1x1x128xf32>
    %39 = vector.shape_cast %38 : vector<1x1x1x128xf32> to vector<1x1x128xf32>
    %c12 = arith.constant 12 : index
    %c0_47 = arith.constant 0 : index
    %c0_48 = arith.constant 0 : index
    %c0_49 = arith.constant 0 : index
    %40 = vector.load %arg3[%c12, %c0_47, %c0_48, %c0_49] : memref<25x1x1x128xf32, #tpu.memory_space<vmem>>, vector<1x1x1x128xf32>
    %41 = vector.shape_cast %40 : vector<1x1x1x128xf32> to vector<1x1x128xf32>
    %c13 = arith.constant 13 : index
    %c0_50 = arith.constant 0 : index
    %c0_51 = arith.constant 0 : index
    %c0_52 = arith.constant 0 : index
    %42 = vector.load %arg3[%c13, %c0_50, %c0_51, %c0_52] : memref<25x1x1x128xf32, #tpu.memory_space<vmem>>, vector<1x1x1x128xf32>
    %43 = vector.shape_cast %42 : vector<1x1x1x128xf32> to vector<1x1x128xf32>
    %c14 = arith.constant 14 : index
    %c0_53 = arith.constant 0 : index
    %c0_54 = arith.constant 0 : index
    %c0_55 = arith.constant 0 : index
    %44 = vector.load %arg3[%c14, %c0_53, %c0_54, %c0_55] : memref<25x1x1x128xf32, #tpu.memory_space<vmem>>, vector<1x1x1x128xf32>
    %45 = vector.shape_cast %44 : vector<1x1x1x128xf32> to vector<1x1x128xf32>
    %c15 = arith.constant 15 : index
    %c0_56 = arith.constant 0 : index
    %c0_57 = arith.constant 0 : index
    %c0_58 = arith.constant 0 : index
    %46 = vector.load %arg3[%c15, %c0_56, %c0_57, %c0_58] : memref<25x1x1x128xf32, #tpu.memory_space<vmem>>, vector<1x1x1x128xf32>
    %47 = vector.shape_cast %46 : vector<1x1x1x128xf32> to vector<1x1x128xf32>
    %c16 = arith.constant 16 : index
    %c0_59 = arith.constant 0 : index
    %c0_60 = arith.constant 0 : index
    %c0_61 = arith.constant 0 : index
    %48 = vector.load %arg3[%c16, %c0_59, %c0_60, %c0_61] : memref<25x1x1x128xf32, #tpu.memory_space<vmem>>, vector<1x1x1x128xf32>
    %49 = vector.shape_cast %48 : vector<1x1x1x128xf32> to vector<1x1x128xf32>
    %c17 = arith.constant 17 : index
    %c0_62 = arith.constant 0 : index
    %c0_63 = arith.constant 0 : index
    %c0_64 = arith.constant 0 : index
    %50 = vector.load %arg3[%c17, %c0_62, %c0_63, %c0_64] : memref<25x1x1x128xf32, #tpu.memory_space<vmem>>, vector<1x1x1x128xf32>
    %51 = vector.shape_cast %50 : vector<1x1x1x128xf32> to vector<1x1x128xf32>
    %c18_65 = arith.constant 18 : index
    %c0_66 = arith.constant 0 : index
    %c0_67 = arith.constant 0 : index
    %c0_68 = arith.constant 0 : index
    %52 = vector.load %arg3[%c18_65, %c0_66, %c0_67, %c0_68] : memref<25x1x1x128xf32, #tpu.memory_space<vmem>>, vector<1x1x1x128xf32>
    %53 = vector.shape_cast %52 : vector<1x1x1x128xf32> to vector<1x1x128xf32>
    %c19 = arith.constant 19 : index
    %c0_69 = arith.constant 0 : index
    %c0_70 = arith.constant 0 : index
    %c0_71 = arith.constant 0 : index
    %54 = vector.load %arg3[%c19, %c0_69, %c0_70, %c0_71] : memref<25x1x1x128xf32, #tpu.memory_space<vmem>>, vector<1x1x1x128xf32>
    %55 = vector.shape_cast %54 : vector<1x1x1x128xf32> to vector<1x1x128xf32>
    %c20 = arith.constant 20 : index
    %c0_72 = arith.constant 0 : index
    %c0_73 = arith.constant 0 : index
    %c0_74 = arith.constant 0 : index
    %56 = vector.load %arg3[%c20, %c0_72, %c0_73, %c0_74] : memref<25x1x1x128xf32, #tpu.memory_space<vmem>>, vector<1x1x1x128xf32>
    %57 = vector.shape_cast %56 : vector<1x1x1x128xf32> to vector<1x1x128xf32>
    %c21 = arith.constant 21 : index
    %c0_75 = arith.constant 0 : index
    %c0_76 = arith.constant 0 : index
    %c0_77 = arith.constant 0 : index
    %58 = vector.load %arg3[%c21, %c0_75, %c0_76, %c0_77] : memref<25x1x1x128xf32, #tpu.memory_space<vmem>>, vector<1x1x1x128xf32>
    %59 = vector.shape_cast %58 : vector<1x1x1x128xf32> to vector<1x1x128xf32>
    %c22 = arith.constant 22 : index
    %c0_78 = arith.constant 0 : index
    %c0_79 = arith.constant 0 : index
    %c0_80 = arith.constant 0 : index
    %60 = vector.load %arg3[%c22, %c0_78, %c0_79, %c0_80] : memref<25x1x1x128xf32, #tpu.memory_space<vmem>>, vector<1x1x1x128xf32>
    %61 = vector.shape_cast %60 : vector<1x1x1x128xf32> to vector<1x1x128xf32>
    %c23 = arith.constant 23 : index
    %c0_81 = arith.constant 0 : index
    %c0_82 = arith.constant 0 : index
    %c0_83 = arith.constant 0 : index
    %62 = vector.load %arg3[%c23, %c0_81, %c0_82, %c0_83] : memref<25x1x1x128xf32, #tpu.memory_space<vmem>>, vector<1x1x1x128xf32>
    %63 = vector.shape_cast %62 : vector<1x1x1x128xf32> to vector<1x1x128xf32>
    %c24 = arith.constant 24 : index
    %c0_84 = arith.constant 0 : index
    %c0_85 = arith.constant 0 : index
    %c0_86 = arith.constant 0 : index
    %64 = vector.load %arg3[%c24, %c0_84, %c0_85, %c0_86] : memref<25x1x1x128xf32, #tpu.memory_space<vmem>>, vector<1x1x1x128xf32>
    %65 = vector.shape_cast %64 : vector<1x1x1x128xf32> to vector<1x1x128xf32>
    %c0_87 = arith.constant 0 : index
    %c0_88 = arith.constant 0 : index
    %c0_89 = arith.constant 0 : index
    %66 = vector.load %arg4[%c0_87, %c0_88, %c0_89] : memref<1x1x128xf32, #tpu.memory_space<vmem>>, vector<1x1x128xf32>
    %67 = vector.shape_cast %66 : vector<1x1x128xf32> to vector<1x1x128xf32>
    %68 = vector.broadcast %67 : vector<1x1x128xf32> to vector<8x16x128xf32>
    %c0_90 = arith.constant 0 : index
    %c0_91 = arith.constant 0 : index
    %c0_92 = arith.constant 0 : index
    %69 = vector.load %arg6[%c0_90, %c0_91, %c0_92] : memref<12x20x128xf32, #tpu.memory_space<vmem>>, vector<12x16x128xf32>
    %70 = vector.extract_strided_slice %69 {offsets = [0, 0, 0], sizes = [8, 16, 128], strides = [1, 1, 1]} : vector<12x16x128xf32> to vector<8x16x128xf32>
    %71 = vector.broadcast %17 : vector<1x1x128xf32> to vector<8x16x128xf32>
    %72 = arith.mulf %70, %71 : vector<8x16x128xf32>
    %73 = arith.addf %68, %72 : vector<8x16x128xf32>
    %74 = vector.extract_strided_slice %69 {offsets = [1, 0, 0], sizes = [8, 16, 128], strides = [1, 1, 1]} : vector<12x16x128xf32> to vector<8x16x128xf32>
    %75 = vector.broadcast %27 : vector<1x1x128xf32> to vector<8x16x128xf32>
    %76 = arith.mulf %74, %75 : vector<8x16x128xf32>
    %77 = arith.addf %73, %76 : vector<8x16x128xf32>
    %78 = vector.extract_strided_slice %69 {offsets = [2, 0, 0], sizes = [8, 16, 128], strides = [1, 1, 1]} : vector<12x16x128xf32> to vector<8x16x128xf32>
    %79 = vector.broadcast %37 : vector<1x1x128xf32> to vector<8x16x128xf32>
    %80 = arith.mulf %78, %79 : vector<8x16x128xf32>
    %81 = arith.addf %77, %80 : vector<8x16x128xf32>
    %82 = vector.extract_strided_slice %69 {offsets = [3, 0, 0], sizes = [8, 16, 128], strides = [1, 1, 1]} : vector<12x16x128xf32> to vector<8x16x128xf32>
    %83 = vector.broadcast %47 : vector<1x1x128xf32> to vector<8x16x128xf32>
    %84 = arith.mulf %82, %83 : vector<8x16x128xf32>
    %85 = arith.addf %81, %84 : vector<8x16x128xf32>
    %86 = vector.extract_strided_slice %69 {offsets = [4, 0, 0], sizes = [8, 16, 128], strides = [1, 1, 1]} : vector<12x16x128xf32> to vector<8x16x128xf32>
    %87 = vector.broadcast %57 : vector<1x1x128xf32> to vector<8x16x128xf32>
    %88 = arith.mulf %86, %87 : vector<8x16x128xf32>
    %89 = arith.addf %85, %88 : vector<8x16x128xf32>
    %c0_93 = arith.constant 0 : index
    %c1_94 = arith.constant 1 : index
    %c0_95 = arith.constant 0 : index
    %90 = vector.load %arg6[%c0_93, %c1_94, %c0_95] : memref<12x20x128xf32, #tpu.memory_space<vmem>>, vector<12x16x128xf32>
    %91 = vector.extract_strided_slice %90 {offsets = [0, 0, 0], sizes = [8, 16, 128], strides = [1, 1, 1]} : vector<12x16x128xf32> to vector<8x16x128xf32>
    %92 = vector.broadcast %19 : vector<1x1x128xf32> to vector<8x16x128xf32>
    %93 = arith.mulf %91, %92 : vector<8x16x128xf32>
    %94 = arith.addf %89, %93 : vector<8x16x128xf32>
    %95 = vector.extract_strided_slice %90 {offsets = [1, 0, 0], sizes = [8, 16, 128], strides = [1, 1, 1]} : vector<12x16x128xf32> to vector<8x16x128xf32>
    %96 = vector.broadcast %29 : vector<1x1x128xf32> to vector<8x16x128xf32>
    %97 = arith.mulf %95, %96 : vector<8x16x128xf32>
    %98 = arith.addf %94, %97 : vector<8x16x128xf32>
    %99 = vector.extract_strided_slice %90 {offsets = [2, 0, 0], sizes = [8, 16, 128], strides = [1, 1, 1]} : vector<12x16x128xf32> to vector<8x16x128xf32>
    %100 = vector.broadcast %39 : vector<1x1x128xf32> to vector<8x16x128xf32>
    %101 = arith.mulf %99, %100 : vector<8x16x128xf32>
    %102 = arith.addf %98, %101 : vector<8x16x128xf32>
    %103 = vector.extract_strided_slice %90 {offsets = [3, 0, 0], sizes = [8, 16, 128], strides = [1, 1, 1]} : vector<12x16x128xf32> to vector<8x16x128xf32>
    %104 = vector.broadcast %49 : vector<1x1x128xf32> to vector<8x16x128xf32>
    %105 = arith.mulf %103, %104 : vector<8x16x128xf32>
    %106 = arith.addf %102, %105 : vector<8x16x128xf32>
    %107 = vector.extract_strided_slice %90 {offsets = [4, 0, 0], sizes = [8, 16, 128], strides = [1, 1, 1]} : vector<12x16x128xf32> to vector<8x16x128xf32>
    %108 = vector.broadcast %59 : vector<1x1x128xf32> to vector<8x16x128xf32>
    %109 = arith.mulf %107, %108 : vector<8x16x128xf32>
    %110 = arith.addf %106, %109 : vector<8x16x128xf32>
    %c0_96 = arith.constant 0 : index
    %c2_97 = arith.constant 2 : index
    %c0_98 = arith.constant 0 : index
    %111 = vector.load %arg6[%c0_96, %c2_97, %c0_98] : memref<12x20x128xf32, #tpu.memory_space<vmem>>, vector<12x16x128xf32>
    %112 = vector.extract_strided_slice %111 {offsets = [0, 0, 0], sizes = [8, 16, 128], strides = [1, 1, 1]} : vector<12x16x128xf32> to vector<8x16x128xf32>
    %113 = vector.broadcast %21 : vector<1x1x128xf32> to vector<8x16x128xf32>
    %114 = arith.mulf %112, %113 : vector<8x16x128xf32>
    %115 = arith.addf %110, %114 : vector<8x16x128xf32>
    %116 = vector.extract_strided_slice %111 {offsets = [1, 0, 0], sizes = [8, 16, 128], strides = [1, 1, 1]} : vector<12x16x128xf32> to vector<8x16x128xf32>
    %117 = vector.broadcast %31 : vector<1x1x128xf32> to vector<8x16x128xf32>
    %118 = arith.mulf %116, %117 : vector<8x16x128xf32>
    %119 = arith.addf %115, %118 : vector<8x16x128xf32>
    %120 = vector.extract_strided_slice %111 {offsets = [2, 0, 0], sizes = [8, 16, 128], strides = [1, 1, 1]} : vector<12x16x128xf32> to vector<8x16x128xf32>
    %121 = vector.broadcast %41 : vector<1x1x128xf32> to vector<8x16x128xf32>
    %122 = arith.mulf %120, %121 : vector<8x16x128xf32>
    %123 = arith.addf %119, %122 : vector<8x16x128xf32>
    %124 = vector.extract_strided_slice %111 {offsets = [3, 0, 0], sizes = [8, 16, 128], strides = [1, 1, 1]} : vector<12x16x128xf32> to vector<8x16x128xf32>
    %125 = vector.broadcast %51 : vector<1x1x128xf32> to vector<8x16x128xf32>
    %126 = arith.mulf %124, %125 : vector<8x16x128xf32>
    %127 = arith.addf %123, %126 : vector<8x16x128xf32>
    %128 = vector.extract_strided_slice %111 {offsets = [4, 0, 0], sizes = [8, 16, 128], strides = [1, 1, 1]} : vector<12x16x128xf32> to vector<8x16x128xf32>
    %129 = vector.broadcast %61 : vector<1x1x128xf32> to vector<8x16x128xf32>
    %130 = arith.mulf %128, %129 : vector<8x16x128xf32>
    %131 = arith.addf %127, %130 : vector<8x16x128xf32>
    %c0_99 = arith.constant 0 : index
    %c3_100 = arith.constant 3 : index
    %c0_101 = arith.constant 0 : index
    %132 = vector.load %arg6[%c0_99, %c3_100, %c0_101] : memref<12x20x128xf32, #tpu.memory_space<vmem>>, vector<12x16x128xf32>
    %133 = vector.extract_strided_slice %132 {offsets = [0, 0, 0], sizes = [8, 16, 128], strides = [1, 1, 1]} : vector<12x16x128xf32> to vector<8x16x128xf32>
    %134 = vector.broadcast %23 : vector<1x1x128xf32> to vector<8x16x128xf32>
    %135 = arith.mulf %133, %134 : vector<8x16x128xf32>
    %136 = arith.addf %131, %135 : vector<8x16x128xf32>
    %137 = vector.extract_strided_slice %132 {offsets = [1, 0, 0], sizes = [8, 16, 128], strides = [1, 1, 1]} : vector<12x16x128xf32> to vector<8x16x128xf32>
    %138 = vector.broadcast %33 : vector<1x1x128xf32> to vector<8x16x128xf32>
    %139 = arith.mulf %137, %138 : vector<8x16x128xf32>
    %140 = arith.addf %136, %139 : vector<8x16x128xf32>
    %141 = vector.extract_strided_slice %132 {offsets = [2, 0, 0], sizes = [8, 16, 128], strides = [1, 1, 1]} : vector<12x16x128xf32> to vector<8x16x128xf32>
    %142 = vector.broadcast %43 : vector<1x1x128xf32> to vector<8x16x128xf32>
    %143 = arith.mulf %141, %142 : vector<8x16x128xf32>
    %144 = arith.addf %140, %143 : vector<8x16x128xf32>
    %145 = vector.extract_strided_slice %132 {offsets = [3, 0, 0], sizes = [8, 16, 128], strides = [1, 1, 1]} : vector<12x16x128xf32> to vector<8x16x128xf32>
    %146 = vector.broadcast %53 : vector<1x1x128xf32> to vector<8x16x128xf32>
    %147 = arith.mulf %145, %146 : vector<8x16x128xf32>
    %148 = arith.addf %144, %147 : vector<8x16x128xf32>
    %149 = vector.extract_strided_slice %132 {offsets = [4, 0, 0], sizes = [8, 16, 128], strides = [1, 1, 1]} : vector<12x16x128xf32> to vector<8x16x128xf32>
    %150 = vector.broadcast %63 : vector<1x1x128xf32> to vector<8x16x128xf32>
    %151 = arith.mulf %149, %150 : vector<8x16x128xf32>
    %152 = arith.addf %148, %151 : vector<8x16x128xf32>
    %c0_102 = arith.constant 0 : index
    %c4_103 = arith.constant 4 : index
    %c0_104 = arith.constant 0 : index
    %153 = vector.load %arg6[%c0_102, %c4_103, %c0_104] : memref<12x20x128xf32, #tpu.memory_space<vmem>>, vector<12x16x128xf32>
    %154 = vector.extract_strided_slice %153 {offsets = [0, 0, 0], sizes = [8, 16, 128], strides = [1, 1, 1]} : vector<12x16x128xf32> to vector<8x16x128xf32>
    %155 = vector.broadcast %25 : vector<1x1x128xf32> to vector<8x16x128xf32>
    %156 = arith.mulf %154, %155 : vector<8x16x128xf32>
    %157 = arith.addf %152, %156 : vector<8x16x128xf32>
    %158 = vector.extract_strided_slice %153 {offsets = [1, 0, 0], sizes = [8, 16, 128], strides = [1, 1, 1]} : vector<12x16x128xf32> to vector<8x16x128xf32>
    %159 = vector.broadcast %35 : vector<1x1x128xf32> to vector<8x16x128xf32>
    %160 = arith.mulf %158, %159 : vector<8x16x128xf32>
    %161 = arith.addf %157, %160 : vector<8x16x128xf32>
    %162 = vector.extract_strided_slice %153 {offsets = [2, 0, 0], sizes = [8, 16, 128], strides = [1, 1, 1]} : vector<12x16x128xf32> to vector<8x16x128xf32>
    %163 = vector.broadcast %45 : vector<1x1x128xf32> to vector<8x16x128xf32>
    %164 = arith.mulf %162, %163 : vector<8x16x128xf32>
    %165 = arith.addf %161, %164 : vector<8x16x128xf32>
    %166 = vector.extract_strided_slice %153 {offsets = [3, 0, 0], sizes = [8, 16, 128], strides = [1, 1, 1]} : vector<12x16x128xf32> to vector<8x16x128xf32>
    %167 = vector.broadcast %55 : vector<1x1x128xf32> to vector<8x16x128xf32>
    %168 = arith.mulf %166, %167 : vector<8x16x128xf32>
    %169 = arith.addf %165, %168 : vector<8x16x128xf32>
    %170 = vector.extract_strided_slice %153 {offsets = [4, 0, 0], sizes = [8, 16, 128], strides = [1, 1, 1]} : vector<12x16x128xf32> to vector<8x16x128xf32>
    %171 = vector.broadcast %65 : vector<1x1x128xf32> to vector<8x16x128xf32>
    %172 = arith.mulf %170, %171 : vector<8x16x128xf32>
    %173 = arith.addf %169, %172 : vector<8x16x128xf32>
    %c0_105 = arith.constant 0 : index
    %c0_106 = arith.constant 0 : index
    %c0_107 = arith.constant 0 : index
    %c0_108 = arith.constant 0 : index
    %174 = vector.load %arg5[%c0_105, %c0_106, %c0_107, %c0_108] : memref<1x8x16x128xf32, #tpu.memory_space<vmem>>, vector<1x8x16x128xf32>
    %175 = vector.shape_cast %174 : vector<1x8x16x128xf32> to vector<8x16x128xf32>
    %176 = vector.shape_cast %173 : vector<8x16x128xf32> to vector<1x8x16x128xf32>
    tpu.vector_store %arg5[%c0_105, %c0_106, %c0_107, %c0_108], %176 {strides = array<i32>} : memref<1x8x16x128xf32, #tpu.memory_space<vmem>>, vector<1x8x16x128xf32>,
    return
  }
  func.func @transform_0(%arg0: i32, %arg1: i32) -> (i32, i32, i32, i32) {
    %c0_i32 = arith.constant 0 : i32
    %c0_i32_0 = arith.constant 0 : i32
    %c0_i32_1 = arith.constant 0 : i32
    %c0_i32_2 = arith.constant 0 : i32
    return %arg0, %c0_i32, %c0_i32_0, %c0_i32_1 : i32, i32, i32, i32
  }
  func.func @transform_1(%arg0: i32, %arg1: i32) -> (i32, i32, i32, i32) {
    %c0_i32 = arith.constant 0 : i32
    %c0_i32_0 = arith.constant 0 : i32
    %c0_i32_1 = arith.constant 0 : i32
    %c0_i32_2 = arith.constant 0 : i32
    %c0_i32_3 = arith.constant 0 : i32
    return %c0_i32, %c0_i32_0, %c0_i32_1, %c0_i32_2 : i32, i32, i32, i32
  }
  func.func @transform_2(%arg0: i32, %arg1: i32) -> (i32, i32, i32) {
    %c0_i32 = arith.constant 0 : i32
    %c0_i32_0 = arith.constant 0 : i32
    %c0_i32_1 = arith.constant 0 : i32
    %c0_i32_2 = arith.constant 0 : i32
    return %c0_i32, %c0_i32_0, %c0_i32_1 : i32, i32, i32
  }
  func.func @transform_3(%arg0: i32, %arg1: i32) -> (i32, i32, i32, i32) {
    %c0_i32 = arith.constant 0 : i32
    %c0_i32_0 = arith.constant 0 : i32
    %c0_i32_1 = arith.constant 0 : i32
    return %arg0, %arg1, %c0_i32, %c0_i32_0 : i32, i32, i32, i32
  }
}

</mosaic_0001>

<bundles_post_ra>
// kernel: tpu_custom_call.1
= control target key start
LH: loop header
LB: loop body
LE: loop exit
PB: predicated region body
PF: predicated region fallthrough
CT: control target
= control target key end

     0   :  { %s3482_s0 = inlined_call_operand.hbm [shape: f32[2,16,16,128], index: 0, kind: input, shape index: {}]   ;;  %s3483_s1 = inlined_call_operand.hbm [shape: f32[25,1,1,128], index: 1, kind: input, shape index: {}]   ;;  %s3484_s2 = inlined_call_operand.vmem [shape: f32[1,1,128], index: 2, kind: input, shape index: {}]   ;;  %s3485_s3 = inlined_call_operand.hbm [shape: f32[2,16,16,128], index: 3, kind: output, shape index: {}]  }
   0x1   :  { %3669 = sst [smem:[#allocation64_spill]] %s3483_s1 }
   0x2   :  { %3670 = sst [smem:[#allocation65_spill]] %s3485_s3 }
   0x3   :  { %8 = vsyncpa [#allocation4], 0 }
   0x4   :  { %10 = vsyncpa [#allocation4 + $0x1], 0 }
   0x5   :  { %11 = vsyncpa [#allocation7], 0 }
   0x6   :  { %12 = vsyncpa [#allocation5], 0 }
   0x7   :  { %14 = vsyncpa [#allocation5 + $0x1], 0  ;;  %s2010_s12 = smov 0   ;;  %s2012_s13 = smov 0  }
   0x8   :  { %s2014_s14 = smov 0   ;;  %s2016_s15 = smov 0  }
   0x9   :  { %s2018_s16 = smov 0   ;;  %s2020_s17 = smov 0  }
   0xa   :  { %s2022_s18 = smov 0   ;;  %s2024_s19 = smov 0  }
   0xb   :  { %s2026_s20 = smov 0   ;;  %s2028_s21 = smov 0  }
   0xc   :  { %s2030_s22 = smov 0  }
   0xd LB: > { %3671 = sst [smem:[#allocation12_spill]] %s1938_s12  ;;  %s1590_s23 = sadd.s32 4294967295, %s1978_s22   ;;  %s1978_s22 = sphi %s2030_s22, %s20_s22   ;;  %s1974_s21 = sphi %s2028_s21, %s3974_s21   ;;  %s1970_s20 = sphi %s2026_s20, %s3965_s20   ;;  %s1966_s19 = sphi %s2024_s19, %s3973_s19   ;;  %s1962_s18 = sphi %s2022_s18, %s3964_s18   ;;  %s1958_s17 = sphi %s2020_s17, %s3972_s17   ;;  %s1954_s16 = sphi %s2018_s16, %s3971_s16   ;;  %s1950_s15 = sphi %s2016_s15, %s3970_s15   ;;  %s1946_s14 = sphi %s2014_s14, %s3969_s14   ;;  %s1942_s13 = sphi %s2012_s13, %s3968_s13   ;;  %s1938_s12 = sphi %s2010_s12, %s3967_s12  }
   0xe   : > { %3672 = sst [smem:[#allocation13_spill]] %s1970_s20  ;;  %s1591_s24 = sadd.s32 4294967294, %s1978_s22  }
   0xf   : > { %p52_p0 = scmp.ne.s32.totalorder %s1954_s16, %s1950_s15  ;;  %p2066_p1 = scmp.eq.s32.totalorder %s1590_s23, 0 }
  0x10   : > { %p119_p2 = scmp.ne.s32.totalorder %s1946_s14, %s1942_s13  ;;  %p120_p3 = scmp.eq.s32.totalorder %s1590_s23, 3 }
  0x11   : > { %p2074_p4 = por %p2066_p1, %p52_p0  ;;  %p125_p5 = scmp.ne.s32.totalorder %s1942_s13, %s1938_s12 }
  0x12   : > { %p2080_p6 = por %p120_p3, %p119_p2  ;;  %p126_p7 = scmp.eq.s32.totalorder %s1591_s24, 3 }
  0x13   : > { %p1592_p8 = scmp.ge.s32.totalorder %s1978_s22, 1  ;;  %p133_p9 = scmp.lt.s32.totalorder %s1978_s22, 5 }
  0x14   : > { %s3675_s27 = scalar_select %p2080_p6, 1, 0 }
  0x15   : > { %p2086_p10 = por %p126_p7, %p125_p5  ;;  %p2090_p11 = pnand %p1592_p8, %p133_p9 }
  0x16   : > { %3676 = sst [smem:[#allocation14_spill]] %s3675_s27  ;;  %s1980_s6 = smov [#allocation6]  }
  0x17   : > { %s3677_s28 = scalar_select %p2086_p10, 1, 0 }
  0x18   : > { %s3680_s1 = sld [smem:[#allocation64_spill]]  ;;  %p1626_p12 = pneg %p2090_p11 }
  0x19   : > { %3678 = sst [smem:[#allocation15_spill]] %s3677_s28  ;;  %s146_s7 = sshll.u32 %s1980_s6, 4  ;;  %s147_s7 = int_to_ptr.vmem [resolvable:$true] %s146_s7 }
  0x1a   : > { %p1627_p13 = pnand %p1626_p12, %p2066_p1  ;;  %s1981_s8 = smov 16  }
  0x1b   : > { %s1982_s9 = smov 1   ;;  %s29_s10 = sadd.s32 1, %s1970_s20 }
  0x1c   : > { %s32_s11 = sadd.s32 1, %s1974_s21  ;;  %p30_p0 = scmp.ge.s32.totalorder %s29_s10, 2 }
  0x1d   : > { %s39_s15 = sadd.s32 1, %s1958_s17  ;;  %p46_p2 = scmp.ne.s32.totalorder %s1958_s17, %s1954_s16 }
  0x1e   : > { %s144_s5 = sshll.u32 %s3680_s1, 4  ;;  %p47_p3 = scmp.eq.s32.totalorder %s1978_s22, 0  ;;  %s145_s5 = int_to_ptr.hbm [resolvable:$true] %s144_s5 }
  0x1f   : > { %1629 = dma.hbm_to_vmem [thread:$0]  (!%p1627_p13), %s145_s5, 400, %s147_s7, [#allocation7], %s1981_s8, %s1981_s8, %s1982_s9  }
  0x20   : > { %s3976_s10 = smov (%p30_p0, %s29_s10), 0  ;;  %s3978_s11 = smov (!%p30_p0, %s32_s11), %s1974_s21 }
  0x21   : > { %3681 = sst [smem:[#allocation16_spill]] %s3976_s10  ;;  %p2110_p5 = por %p47_p3, %p46_p2 }
  0x22   : > { %s105_s24 = ssub.s32 %s1970_s20, %s3976_s10  ;;  %p34_p7 = scmp.ge.s32.totalorder %s3978_s11, 2 }
  0x23   : > { %s109_s30 = sadd.s32 1, %s1946_s14  ;;  %p1639_p8 = scmp.lt.s32.totalorder %s1978_s22, 4 }
  0x24   : > { %s163_s4 = sand.u32 1, %s1958_s17   ;;  %s3980_s11 = smov (%p34_p7, %s3978_s11), 0 }
  0x25   : > { %3683 = sst [smem:[#allocation17_spill]] %s3980_s11  ;;  %s1595_s5 = sshll.u32 %s163_s4, 8 }
  0x26   : > { %s36_s6 = ssub.s32 %s1974_s21, %s3980_s11  ;;  %s1616_s8 = sshll.u32 %s1974_s21, 8 }
  0x27   : > { %p37_p9 = scmp.eq.s32.totalorder %s36_s6, 0  ;;  %s106_s7 = sor.u32 %s105_s24, %s36_s6 }
  0x28   : > { %p107_p12 = scmp.eq.s32.totalorder %s106_s7, 0  ;;  %s172_s28 = scalar_lea.hbm %s3482_s0, %s1616_s8 }
  0x29   : > { %s2125_s9 = scalar_select %p37_p9, %s1958_s17, %s39_s15  }
  0x2a   : > { %s2128_s1 = scalar_select %p107_p12, %s1946_s14, %s109_s30  }
  0x2b   : > { %s167_s12 = scalar_lea.vmem [#allocation3], %s1595_s5  ;;  %s173_s3 = sshll.u32 %s172_s28, 4  ;;  %s174_s3 = int_to_ptr.hbm [resolvable:$true] %s173_s3 }
  0x2c   : > { %s175_s27 = sshll.u32 %s167_s12, 4  ;;  %p1631_p13 = pnand %p1639_p8, %p2110_p5  ;;  %s176_s27 = int_to_ptr.vmem [resolvable:$true] %s175_s27 }
  0x2d   : > { %s164_s11 = scalar_lea.sflag [#allocation4], %s163_s4  ;;  %s1983_s24 = smov 128  }
  0x2e   : > { %s1984_s6 = smov 8   ;;  %187 = sbr.rel (%p2090_p11) target bundleno = 412 (0x19c), region = 32 }
  0x2f   : > { %1633 = dma.hbm_to_vmem [thread:$0]  (!%p1631_p13), %s174_s3, 4096, %s176_s27, %s164_s11, %s1983_s24, %s1983_s24, %s1984_s6  }
  0x33   : > { %s189_s15 = sand.u32 1, %s1954_s16  }
  0x34   : > { %s1599_s20 = sshll.u32 %s189_s15, 8  ;;  %s190_s10 = scalar_lea.sflag [#allocation4], %s189_s15 }
  0x35   : > { %s2140_s30 = scalar_lea.vmem [#allocation3], %s1599_s20 }
  0x36   : > { %1925 = dma.done.wait (%p2074_p4), %s190_s10, 4096  }
  0x37   : > { %1927 = vsyncadd (%p2074_p4), %s190_s10, 4294963200 }
  0x38   : > { %1929 = dma.done.wait (%p2066_p1), [#allocation7], 400  }
  0x39   : > { %1931 = vsyncadd (%p2066_p1), [#allocation7], 4294966896  ;;  %s219_s3 = sand.u32 1, %s1942_s13   ;;  %s1602_s12 = sshll.u32 %s1962_s18, 3  ;;  %v1985_v0 = vmov 0.0  }
  0x3a   : > { %s1601_s27 = sshll.u32 %s219_s3, 7  ;;  %224 = vst [vmem:[#allocation2] sm:$0x3] %v1985_v0  ;;  %p1603_p1 = scmp.ne.s32.totalorder %s1962_s18, 0 }
  0x3b   : > { %225 = vst [vmem:[#allocation2 + $0x18] sm:$0x3] %v1985_v0  ;;  %s2154_s25 = scalar_lea.vmem [#allocation8], %s1601_s27 }
  0x3c   : > { %226 = vst [vmem:[#allocation2 + $0x30] sm:$0x3] %v1985_v0 }
  0x3d   : > { %227 = vst [vmem:[#allocation2 + $0x48] sm:$0x3] %v1985_v0 }
  0x3e   : > { %228 = vst [vmem:[#allocation2 + $0x60] sm:$0x3] %v1985_v0 }
  0x3f   : > { %229 = vst [vmem:[#allocation2 + $0x78] sm:$0x3] %v1985_v0 }
  0x40   : > { %230 = vst [vmem:[#allocation2 + $0x90] sm:$0x3] %v1985_v0 }
  0x41   : > { %231 = vst [vmem:[#allocation2 + $0xa8] sm:$0x3] %v1985_v0 }
  0x42   : > { %232 = vst [vmem:[#allocation2 + $0xc0] sm:$0x3] %v1985_v0 }
  0x43   : > { %233 = vst [vmem:[#allocation2 + $0xd8] sm:$0x3] %v1985_v0 }
  0x44   : > { %234 = vst [vmem:[#allocation2 + $0xf0] sm:$0x3] %v1985_v0 }
  0x45   : > { %235 = vst [vmem:[#allocation2 + $0x108] sm:$0x3] %v1985_v0 }
  0x46   : > { %236 = vst [vmem:[#allocation2 + $0x12] sm:$0x3] %v1985_v0 }
  0x47   : > { %237 = vst [vmem:[#allocation2 + $0x2a] sm:$0x3] %v1985_v0 }
  0x48   : > { %238 = vst [vmem:[#allocation2 + $0x42] sm:$0x3] %v1985_v0 }
  0x49   : > { %239 = vst [vmem:[#allocation2 + $0x5a] sm:$0x3] %v1985_v0 }
  0x4a   : > { %240 = vst [vmem:[#allocation2 + $0x72] sm:$0x3] %v1985_v0 }
  0x4b   : > { %241 = vst [vmem:[#allocation2 + $0x8a] sm:$0x3] %v1985_v0 }
  0x4c   : > { %242 = vst [vmem:[#allocation2 + $0xa2] sm:$0x3] %v1985_v0 }
  0x4d   : > { %243 = vst [vmem:[#allocation2 + $0xba] sm:$0x3] %v1985_v0  ;;  %251 = sbr.rel (%p1603_p1) target bundleno = 107 (0x6b), region = 44 }
  0x4e   : > { %244 = vst [vmem:[#allocation2 + $0xd2] sm:$0x3] %v1985_v0 }
  0x4f   : > { %245 = vst [vmem:[#allocation2 + $0xea] sm:$0x3] %v1985_v0 }
  0x50   : > { %246 = vst [vmem:[#allocation2 + $0x102] sm:$0x3] %v1985_v0 }
  0x51   : > { %247 = vst [vmem:[#allocation2 + $0x11a] sm:$0x3] %v1985_v0 }
  0x52   : > { %v1986_v1 = vmov 0.0   ;;  %v256_v2 = vld [vmem:[%s2140_s30] sm:$0xff]  ;;  %v257_v3 = vld [vmem:[%s2140_s30 + $0x8] sm:$0xff]  ;;  %v258_v4 = vld [vmem:[%s2140_s30 + $0x10] sm:$0xff] }
  0x53   : > { %252 = vst [vmem:[#allocation2 + $0x2] sm:$0xff] %v1986_v1  ;;  %v259_v5 = vld [vmem:[%s2140_s30 + $0x18] sm:$0xff]  ;;  %v260_v6 = vld [vmem:[%s2140_s30 + $0x20] sm:$0xff]  ;;  %v261_v7 = vld [vmem:[%s2140_s30 + $0x28] sm:$0xff] }
  0x54   : > { %253 = vst [vmem:[#allocation2 + $0xa] sm:$0xff] %v1986_v1  ;;  %v262_v8 = vld [vmem:[%s2140_s30 + $0x30] sm:$0xff]  ;;  %v263_v9 = vld [vmem:[%s2140_s30 + $0x38] sm:$0xff]  ;;  %v264_v10 = vld [vmem:[%s2140_s30 + $0x40] sm:$0xff] }
  0x55   : > { %254 = vst [vmem:[#allocation2 + $0x1a] sm:$0xff] %v1986_v1  ;;  %v265_v11 = vld [vmem:[%s2140_s30 + $0x48] sm:$0xff]  ;;  %v266_v12 = vld [vmem:[%s2140_s30 + $0x50] sm:$0xff]  ;;  %v267_v13 = vld [vmem:[%s2140_s30 + $0x58] sm:$0xff] }
  0x56   : > { %255 = vst [vmem:[#allocation2 + $0x22] sm:$0xff] %v1986_v1  ;;  %v268_v14 = vld [vmem:[%s2140_s30 + $0x60] sm:$0xff]  ;;  %v269_v15 = vld [vmem:[%s2140_s30 + $0x68] sm:$0xff]  ;;  %v270_v16 = vld [vmem:[%s2140_s30 + $0x70] sm:$0xff] }
  0x57   : > { %277 = vst [vmem:[#allocation2 + $0x32] sm:$0xff] %v256_v2  ;;  %v271_v17 = vld [vmem:[%s2140_s30 + $0x78] sm:$0xff]  ;;  %v272_v18 = vld [vmem:[%s2140_s30 + $0x80] sm:$0xff]  ;;  %v273_v19 = vld [vmem:[%s2140_s30 + $0x88] sm:$0xff] }
  0x58   : > { %278 = vst [vmem:[#allocation2 + $0x3a] sm:$0xff] %v257_v3  ;;  %v274_v20 = vld [vmem:[%s2140_s30 + $0x90] sm:$0xff]  ;;  %v275_v21 = vld [vmem:[%s2140_s30 + $0x98] sm:$0xff] }
  0x59   : > { %279 = vst [vmem:[#allocation2 + $0x4a] sm:$0xff] %v258_v4 }
  0x5a   : > { %280 = vst [vmem:[#allocation2 + $0x52] sm:$0xff] %v259_v5 }
  0x5b   : > { %281 = vst [vmem:[#allocation2 + $0x62] sm:$0xff] %v260_v6 }
  0x5c   : > { %282 = vst [vmem:[#allocation2 + $0x6a] sm:$0xff] %v261_v7 }
  0x5d   : > { %283 = vst [vmem:[#allocation2 + $0x7a] sm:$0xff] %v262_v8 }
  0x5e   : > { %284 = vst [vmem:[#allocation2 + $0x82] sm:$0xff] %v263_v9 }
  0x5f   : > { %285 = vst [vmem:[#allocation2 + $0x92] sm:$0xff] %v264_v10 }
  0x60   : > { %286 = vst [vmem:[#allocation2 + $0x9a] sm:$0xff] %v265_v11 }
  0x61   : > { %287 = vst [vmem:[#allocation2 + $0xaa] sm:$0xff] %v266_v12 }
  0x62   : > { %288 = vst [vmem:[#allocation2 + $0xb2] sm:$0xff] %v267_v13 }
  0x63   : > { %289 = vst [vmem:[#allocation2 + $0xc2] sm:$0xff] %v268_v14 }
  0x64   : > { %290 = vst [vmem:[#allocation2 + $0xca] sm:$0xff] %v269_v15 }
  0x65   : > { %291 = vst [vmem:[#allocation2 + $0xda] sm:$0xff] %v270_v16 }
  0x66   : > { %292 = vst [vmem:[#allocation2 + $0xe2] sm:$0xff] %v271_v17 }
  0x67   : > { %293 = vst [vmem:[#allocation2 + $0xf2] sm:$0xff] %v272_v18 }
  0x68   : > { %294 = vst [vmem:[#allocation2 + $0xfa] sm:$0xff] %v273_v19 }
  0x69   : > { %295 = vst [vmem:[#allocation2 + $0x10a] sm:$0xff] %v274_v20 }
  0x6a   : > { %296 = vst [vmem:[#allocation2 + $0x112] sm:$0xff] %v275_v21 }
  0x6b PF: > { %p1604_p4 = scmp.ne.s32.totalorder %s1962_s18, 1 }
  0x6c   : > { %s1605_s26 = sadd.s32 (!%p1604_p4), 4294967294, %s1602_s12 }
  0x6d   : > { %300 = sbr.rel (%p1604_p4) target bundleno = 139 (0x8b), region = 48  ;;  %s1606_s28 = sshll.u32 (!%p1604_p4), %s1605_s26, 4 }
  0x6e   : > { %s2181_s29 = scalar_lea.vmem (!%p1604_p4), %s2140_s30, %s1606_s28 [#allocation3] }
  0x72   : > { %v1987_v22 = vmov 0.0   ;;  %v304_v23 = vld [vmem:[%s2181_s29] sm:$0xff]  ;;  %v305_v24 = vld [vmem:[%s2181_s29 + $0x8] sm:$0xff]  ;;  %v306_v25 = vld [vmem:[%s2181_s29 + $0x10] sm:$0xff] }
  0x73   : > { %345 = vst [vmem:[#allocation2 + $0xf2] sm:$0xff] %v1987_v22  ;;  %v307_v26 = vld [vmem:[%s2181_s29 + $0x18] sm:$0xff]  ;;  %v308_v27 = vld [vmem:[%s2181_s29 + $0x20] sm:$0xff]  ;;  %v309_v28 = vld [vmem:[%s2181_s29 + $0x28] sm:$0xff] }
  0x74   : > { %346 = vst [vmem:[#allocation2 + $0xfa] sm:$0xff] %v1987_v22  ;;  %v310_v29 = vld [vmem:[%s2181_s29 + $0x30] sm:$0xff]  ;;  %v311_v30 = vld [vmem:[%s2181_s29 + $0x38] sm:$0xff]  ;;  %v312_v31 = vld [vmem:[%s2181_s29 + $0x40] sm:$0xff] }
  0x75   : > { %347 = vst [vmem:[#allocation2 + $0x10a] sm:$0xff] %v1987_v22  ;;  %v313_v32 = vld [vmem:[%s2181_s29 + $0x48] sm:$0xff]  ;;  %v314_v33 = vld [vmem:[%s2181_s29 + $0x50] sm:$0xff]  ;;  %v315_v34 = vld [vmem:[%s2181_s29 + $0x58] sm:$0xff] }
  0x76   : > { %324 = vst [vmem:[#allocation2 + $0x2] sm:$0xff] %v304_v23  ;;  %v316_v35 = vld [vmem:[%s2181_s29 + $0x60] sm:$0xff]  ;;  %v317_v36 = vld [vmem:[%s2181_s29 + $0x68] sm:$0xff]  ;;  %v318_v37 = vld [vmem:[%s2181_s29 + $0x70] sm:$0xff] }
  0x77   : > { %325 = vst [vmem:[#allocation2 + $0xa] sm:$0xff] %v305_v24  ;;  %v319_v38 = vld [vmem:[%s2181_s29 + $0x78] sm:$0xff]  ;;  %v320_v39 = vld [vmem:[%s2181_s29 + $0x80] sm:$0xff]  ;;  %v321_v40 = vld [vmem:[%s2181_s29 + $0x88] sm:$0xff] }
  0x78   : > { %326 = vst [vmem:[#allocation2 + $0x1a] sm:$0xff] %v306_v25  ;;  %v322_v41 = vld [vmem:[%s2181_s29 + $0x90] sm:$0xff]  ;;  %v323_v42 = vld [vmem:[%s2181_s29 + $0x98] sm:$0xff] }
  0x79   : > { %327 = vst [vmem:[#allocation2 + $0x22] sm:$0xff] %v307_v26 }
  0x7a   : > { %328 = vst [vmem:[#allocation2 + $0x32] sm:$0xff] %v308_v27 }
  0x7b   : > { %329 = vst [vmem:[#allocation2 + $0x3a] sm:$0xff] %v309_v28 }
  0x7c   : > { %330 = vst [vmem:[#allocation2 + $0x4a] sm:$0xff] %v310_v29 }
  0x7d   : > { %331 = vst [vmem:[#allocation2 + $0x52] sm:$0xff] %v311_v30 }
  0x7e   : > { %332 = vst [vmem:[#allocation2 + $0x62] sm:$0xff] %v312_v31 }
  0x7f   : > { %333 = vst [vmem:[#allocation2 + $0x6a] sm:$0xff] %v313_v32 }
  0x80   : > { %334 = vst [vmem:[#allocation2 + $0x7a] sm:$0xff] %v314_v33 }
  0x81   : > { %335 = vst [vmem:[#allocation2 + $0x82] sm:$0xff] %v315_v34 }
  0x82   : > { %336 = vst [vmem:[#allocation2 + $0x92] sm:$0xff] %v316_v35 }
  0x83   : > { %337 = vst [vmem:[#allocation2 + $0x9a] sm:$0xff] %v317_v36 }
  0x84   : > { %338 = vst [vmem:[#allocation2 + $0xaa] sm:$0xff] %v318_v37 }
  0x85   : > { %339 = vst [vmem:[#allocation2 + $0xb2] sm:$0xff] %v319_v38 }
  0x86   : > { %340 = vst [vmem:[#allocation2 + $0xc2] sm:$0xff] %v320_v39 }
  0x87   : > { %341 = vst [vmem:[#allocation2 + $0xca] sm:$0xff] %v321_v40 }
  0x88   : > { %342 = vst [vmem:[#allocation2 + $0xda] sm:$0xff] %v322_v41 }
  0x89   : > { %343 = vst [vmem:[#allocation2 + $0xe2] sm:$0xff] %v323_v42 }
  0x8a   : > { %348 = vst [vmem:[#allocation2 + $0x112] sm:$0xff] %v1987_v22 }
  0x8b PF: > { %p349_p11 = scmp.gt.s32.totalorder %s1962_s18, 0  ;;  %p350_p0 = scmp.lt.s32.totalorder %s1962_s18, 1 }
  0x8d   : > { %p351_p2 = pnand %p350_p0, %p349_p11 }
  0x8e   : > { %s1607_s11 = sadd.s32 (!%p351_p2), 4294967294, %s1602_s12 }
  0x8f   : > { %354 = sbr.rel (%p351_p2) target bundleno = 173 (0xad), region = 52  ;;  %s1608_s23 = sshll.u32 (!%p351_p2), %s1607_s11, 4 }
  0x90   : > { %s2208_s4 = scalar_lea.vmem (!%p351_p2), %s2140_s30, %s1608_s23 [#allocation3] }
  0x94   : > { %v358_v43 = vld [vmem:[%s2208_s4] sm:$0xff]  ;;  %v359_v44 = vld [vmem:[%s2208_s4 + $0x8] sm:$0xff]  ;;  %v360_v45 = vld [vmem:[%s2208_s4 + $0x10] sm:$0xff] }
  0x95   : > { %382 = vst [vmem:[#allocation2 + $0x2] sm:$0xff] %v358_v43  ;;  %v361_v46 = vld [vmem:[%s2208_s4 + $0x18] sm:$0xff]  ;;  %v362_v47 = vld [vmem:[%s2208_s4 + $0x20] sm:$0xff]  ;;  %v363_v48 = vld [vmem:[%s2208_s4 + $0x28] sm:$0xff] }
  0x96   : > { %383 = vst [vmem:[#allocation2 + $0xa] sm:$0xff] %v359_v44  ;;  %v364_v49 = vld [vmem:[%s2208_s4 + $0x30] sm:$0xff]  ;;  %v365_v50 = vld [vmem:[%s2208_s4 + $0x38] sm:$0xff]  ;;  %v366_v51 = vld [vmem:[%s2208_s4 + $0x40] sm:$0xff] }
  0x97   : > { %384 = vst [vmem:[#allocation2 + $0x1a] sm:$0xff] %v360_v45  ;;  %v367_v52 = vld [vmem:[%s2208_s4 + $0x48] sm:$0xff]  ;;  %v368_v53 = vld [vmem:[%s2208_s4 + $0x50] sm:$0xff]  ;;  %v369_v54 = vld [vmem:[%s2208_s4 + $0x58] sm:$0xff] }
  0x98   : > { %385 = vst [vmem:[#allocation2 + $0x22] sm:$0xff] %v361_v46  ;;  %v370_v55 = vld [vmem:[%s2208_s4 + $0x60] sm:$0xff]  ;;  %v371_v56 = vld [vmem:[%s2208_s4 + $0x68] sm:$0xff]  ;;  %v372_v57 = vld [vmem:[%s2208_s4 + $0x70] sm:$0xff] }
  0x99   : > { %386 = vst [vmem:[#allocation2 + $0x32] sm:$0xff] %v362_v47  ;;  %v373_v58 = vld [vmem:[%s2208_s4 + $0x78] sm:$0xff]  ;;  %v374_v59 = vld [vmem:[%s2208_s4 + $0x80] sm:$0xff]  ;;  %v375_v60 = vld [vmem:[%s2208_s4 + $0x88] sm:$0xff] }
  0x9a   : > { %387 = vst [vmem:[#allocation2 + $0x3a] sm:$0xff] %v363_v48  ;;  %v376_v61 = vld [vmem:[%s2208_s4 + $0x90] sm:$0xff]  ;;  %v377_v62 = vld [vmem:[%s2208_s4 + $0x98] sm:$0xff]  ;;  %v378_v63 = vld [vmem:[%s2208_s4 + $0xa0] sm:$0xff] }
  0x9b   : > { %388 = vst [vmem:[#allocation2 + $0x4a] sm:$0xff] %v364_v49  ;;  %v379_v0 = vld [vmem:[%s2208_s4 + $0xa8] sm:$0xff]  ;;  %v380_v1 = vld [vmem:[%s2208_s4 + $0xb0] sm:$0xff]  ;;  %v381_v2 = vld [vmem:[%s2208_s4 + $0xb8] sm:$0xff] }
  0x9c   : > { %389 = vst [vmem:[#allocation2 + $0x52] sm:$0xff] %v365_v50 }
  0x9d   : > { %390 = vst [vmem:[#allocation2 + $0x62] sm:$0xff] %v366_v51 }
  0x9e   : > { %391 = vst [vmem:[#allocation2 + $0x6a] sm:$0xff] %v367_v52 }
  0x9f   : > { %392 = vst [vmem:[#allocation2 + $0x7a] sm:$0xff] %v368_v53 }
  0xa0   : > { %393 = vst [vmem:[#allocation2 + $0x82] sm:$0xff] %v369_v54 }
  0xa1   : > { %394 = vst [vmem:[#allocation2 + $0x92] sm:$0xff] %v370_v55 }
  0xa2   : > { %395 = vst [vmem:[#allocation2 + $0x9a] sm:$0xff] %v371_v56 }
  0xa3   : > { %396 = vst [vmem:[#allocation2 + $0xaa] sm:$0xff] %v372_v57 }
  0xa4   : > { %397 = vst [vmem:[#allocation2 + $0xb2] sm:$0xff] %v373_v58 }
  0xa5   : > { %398 = vst [vmem:[#allocation2 + $0xc2] sm:$0xff] %v374_v59 }
  0xa6   : > { %399 = vst [vmem:[#allocation2 + $0xca] sm:$0xff] %v375_v60 }
  0xa7   : > { %400 = vst [vmem:[#allocation2 + $0xda] sm:$0xff] %v376_v61 }
  0xa8   : > { %401 = vst [vmem:[#allocation2 + $0xe2] sm:$0xff] %v377_v62 }
  0xa9   : > { %402 = vst [vmem:[#allocation2 + $0xf2] sm:$0xff] %v378_v63 }
  0xaa   : > { %403 = vst [vmem:[#allocation2 + $0xfa] sm:$0xff] %v379_v0 }
  0xab   : > { %404 = vst [vmem:[#allocation2 + $0x10a] sm:$0xff] %v380_v1 }
  0xac   : > { %405 = vst [vmem:[#allocation2 + $0x112] sm:$0xff] %v381_v2 }
  0xad PF: > { %v459_v3 = vld [vmem:[#allocation2] sm:$0xff]  ;;  %v461_v6 = vld [vmem:[#allocation2 + $0x18] sm:$0xff]  ;;  %v2243_v8 = vld [vmem:[#allocation6 + $0xa] ss:$0 sm:$0xff]  ;;  %s1617_s6 = sshll.u32 %s1962_s18, 4  ;;  %s1612_s15 = sshll.u32 %s1966_s19, 5 }
  0xae   : > { %v2237_v4 = vld [vmem:[%s3484_s2] ss:$0 sm:$0xff]  ;;  %v2241_v7 = vld [vmem:[#allocation6 + $0x5] ss:$0 sm:$0xff]  ;;  %3687 = vst [vmem:[#allocation21_spill] sm:$0xff] %v2243_v8  ;;  %v463_v11 = vld [vmem:[#allocation2 + $0x30] sm:$0xff]  ;;  %s1483_s20 = sadd.s32 %s1617_s6, %s1612_s15 }
  0xaf   : > { %3684 = vst [vmem:[#allocation18_spill] sm:$0xff] %v2237_v4  ;;  %v2239_v5 = vld [vmem:[#allocation6] ss:$0 sm:$0xff]  ;;  %v2246_v10 = vld [vmem:[#allocation6 + $0xf] ss:$0 sm:$0xff]  ;;  %v521_v12 = vmul.f32 %v2241_v7, %v461_v6  ;;  %v556_v14 = vmul.f32 %v2243_v8, %v463_v11  ;;  %v658_v22 = vld [vmem:[#allocation2 + $0x1] sm:$0xff]  ;;  %v523_v27 = vmul.f32 %v2241_v7, %v463_v11 }
  0xb0   : > { %3685 = vst [vmem:[#allocation19_spill] sm:$0xff] %v2239_v5  ;;  %v486_v9 = vmul.f32 %v2239_v5, %v459_v3  ;;  %v2251_v15 = vld [vmem:[#allocation6 + $0x14] ss:$0 sm:$0xff]  ;;  %v488_v16 = vmul.f32 %v2239_v5, %v461_v6  ;;  %v2254_v17 = vld [vmem:[#allocation2 + $0x48] sm:$0xff]  ;;  %v2258_v20 = vld [vmem:[#allocation6 + $0x1] ss:$0 sm:$0xff]  ;;  %v490_v28 = vmul.f32 %v2239_v5, %v463_v11 }
  0xb1   : > { %3686 = vst [vmem:[#allocation20_spill] sm:$0xff] %v2241_v7  ;;  %v591_v19 = vmul.f32 %v2246_v10, %v2254_v17  ;;  %v2260_v21 = vld [vmem:[#allocation2 + $0x60] sm:$0xff]  ;;  %v685_v30 = vmul.f32 %v2258_v20, %v658_v22  ;;  %v2270_v31 = vld [vmem:[#allocation6 + $0xb] ss:$0 sm:$0xff]  ;;  %v2272_v33 = vld [vmem:[#allocation6 + $0x10] ss:$0 sm:$0xff]  ;;  %v558_v38 = vmul.f32 %v2243_v8, %v2254_v17  ;;  %v525_v43 = vmul.f32 %v2241_v7, %v2254_v17 }
  0xb2   : > { %v502_v13 = vadd.f32 %v2237_v4, %v486_v9  ;;  %3688 = vst [vmem:[#allocation22_spill] sm:$0xff] %v2254_v17  ;;  %v626_v24 = vmul.f32 %v2251_v15, %v2260_v21  ;;  %v2264_v25 = vld [vmem:[#allocation6 + $0x6] ss:$0 sm:$0xff]  ;;  %v504_v26 = vadd.f32 %v2237_v4, %v488_v16  ;;  %v660_v32 = vld [vmem:[#allocation2 + $0x19] sm:$0xff]  ;;  %v2274_v34 = vld [vmem:[#allocation6 + $0x15] ss:$0 sm:$0xff]  ;;  %v506_v42 = vadd.f32 %v2237_v4, %v490_v28 }
  0xb3   : > { %3689 = vst [vmem:[#allocation23_spill] sm:$0xff] %v2260_v21  ;;  %v720_v36 = vmul.f32 %v2264_v25, %v660_v32  ;;  %v2279_v39 = vld [vmem:[#allocation2 + $0x31] sm:$0xff]  ;;  %v2281_v40 = vld [vmem:[#allocation2 + $0x49] sm:$0xff]  ;;  %v2283_v41 = vld [vmem:[#allocation2 + $0x61] sm:$0xff]  ;;  %v593_v55 = vmul.f32 %v2246_v10, %v2260_v21  ;;  %v560_v56 = vmul.f32 %v2243_v8, %v2260_v21  ;;  %v2315_v63 = vmul.f32 %v2258_v20, %v660_v32  ;;  %s1613_s18 = sshll.u32 %s1483_s20, 3  ;;  %s3960_s30 = sld [smem:[#allocation65_spill]] }
  0xb4   : > { %v537_v18 = vadd.f32 %v521_v12, %v502_v13  ;;  %v539_v37 = vadd.f32 %v523_v27, %v504_v26  ;;  %3690 = vst [vmem:[#allocation24_spill] sm:$0xff] %v2279_v39  ;;  %v755_v45 = vmul.f32 %v2270_v31, %v2279_v39  ;;  %v857_v46 = vld [vmem:[#allocation2 + $0x2] sm:$0xff]  ;;  %v790_v49 = vmul.f32 %v2272_v33, %v2281_v40  ;;  %v859_v51 = vld [vmem:[#allocation2 + $0x1a] sm:$0xff]  ;;  %v2298_v52 = vld [vmem:[#allocation6 + $0xc] ss:$0 sm:$0xff]  ;;  %s1486_s26 = sshll.u32 %s2154_s25, 4  ;;  %s1487_s26 = int_to_ptr.vmem [resolvable:$true] %s1486_s26 }
  0xb5   : > { %3691 = vst [vmem:[#allocation25_spill] sm:$0xff] %v2281_v40  ;;  %v2290_v47 = vld [vmem:[#allocation6 + $0x2] ss:$0 sm:$0xff]  ;;  %v2292_v48 = vld [vmem:[#allocation6 + $0x7] ss:$0 sm:$0xff]  ;;  %v825_v50 = vmul.f32 %v2274_v34, %v2283_v41  ;;  %v460_v54 = vld [vmem:[#allocation2 + $0x8] sm:$0xff]  ;;  %v2319_v0 = vmul.f32 %v2264_v25, %v2279_v39  ;;  %v2332_v12 = vmul.f32 %v2270_v31, %v2281_v40  ;;  %v541_v13 = vadd.f32 %v525_v43, %v506_v42 }
  0xb6   : > { %v572_v23 = vadd.f32 %v556_v14, %v537_v18  ;;  %3692 = vst [vmem:[#allocation26_spill] sm:$0xff] %v2283_v41  ;;  %v2300_v53 = vld [vmem:[#allocation6 + $0x11] ss:$0 sm:$0xff]  ;;  %v2306_v58 = vld [vmem:[#allocation2 + $0x32] sm:$0xff]  ;;  %v2312_v61 = vld [vmem:[#allocation2 + $0x20] sm:$0xff]  ;;  %v574_v62 = vadd.f32 %v558_v38, %v539_v37  ;;  %v487_v9 = vmul.f32 %v2239_v5, %v460_v54  ;;  %v884_v16 = vmul.f32 %v2290_v47, %v857_v46  ;;  %s1471_s29 = scalar_lea.sflag [#allocation5], %s219_s3 }
  0xb7   : > { %3693 = vst [vmem:[#allocation27_spill] sm:$0xff] %v2306_v58  ;;  %v2308_v59 = vld [vmem:[#allocation2 + $0x4a] sm:$0xff]  ;;  %v2310_v60 = vld [vmem:[#allocation6 + $0x16] ss:$0 sm:$0xff]  ;;  %v2321_v1 = vld [vmem:[#allocation2 + $0x62] sm:$0xff]  ;;  %v522_v11 = vmul.f32 %v2241_v7, %v2312_v61  ;;  %v919_v18 = vmul.f32 %v2292_v48, %v859_v51  ;;  %v954_v26 = vmul.f32 %v2298_v52, %v2306_v58  ;;  %v2374_v54 = vmul.f32 %v2290_v47, %v859_v51 }
  0xb8   : > { %v607_v29 = vadd.f32 %v591_v19, %v572_v23  ;;  %3694 = vst [vmem:[#allocation28_spill] sm:$0xff] %v2308_v59  ;;  %v1056_v2 = vld [vmem:[#allocation2 + $0x3] sm:$0xff]  ;;  %v2336_v19 = vld [vmem:[#allocation6 + $0xd] ss:$0 sm:$0xff]  ;;  %v2338_v22 = vld [vmem:[#allocation6 + $0x12] ss:$0 sm:$0xff]  ;;  %v2350_v27 = vmul.f32 %v2300_v53, %v2308_v59  ;;  %v2365_v38 = vmul.f32 %v2310_v60, %v2321_v1  ;;  %v609_v46 = vadd.f32 %v593_v55, %v574_v62 }
  0xb9   : > { %3695 = vst [vmem:[#allocation29_spill] sm:$0xff] %v2321_v1  ;;  %v2323_v3 = vld [vmem:[#allocation6 + $0x3] ss:$0 sm:$0xff]  ;;  %v2325_v6 = vld [vmem:[#allocation6 + $0x8] ss:$0 sm:$0xff]  ;;  %v2340_v23 = vld [vmem:[#allocation2 + $0x38] sm:$0xff]  ;;  %v2415_v39 = vmul.f32 %v2292_v48, %v2306_v58  ;;  %s1485_s12 = scalar_lea.hbm %s3960_s30, %s1613_s18 }
  0xba   : > { %v642_v35 = vadd.f32 %v626_v24, %v607_v29  ;;  %3696 = vst [vmem:[#allocation30_spill] sm:$0xff] %v2340_v23  ;;  %v2344_v24 = vmul.f32 %v2272_v33, %v2283_v41  ;;  %v2352_v28 = vld [vmem:[#allocation2 + $0x1b] sm:$0xff]  ;;  %v2354_v29 = vld [vmem:[#allocation2 + $0x33] sm:$0xff]  ;;  %v2367_v42 = vld [vmem:[#allocation2 + $0x63] sm:$0xff]  ;;  %v2387_v41 = vadd.f32 %v560_v56, %v541_v13  ;;  %s1488_s28 = sshll.u32 %s1485_s12, 4  ;;  %s1872_s7 = scalar_lea.hbm %s3960_s30, 512  ;;  %s1489_s28 = int_to_ptr.hbm [resolvable:$true] %s1488_s28 }
  0xbb   : > { %3697 = vst [vmem:[#allocation31_spill] sm:$0xff] %v2354_v29  ;;  %v2358_v32 = vld [vmem:[#allocation6 + $0x17] ss:$0 sm:$0xff]  ;;  %v1255_v43 = vld [vmem:[#allocation2 + $0x4] sm:$0xff]  ;;  %v2391_v51 = vmul.f32 %v2325_v6, %v2352_v28  ;;  %v2395_v55 = vmul.f32 %v2336_v19, %v2354_v29  ;;  %s1866_s11 = sshra.s32 %s1489_s28, 4  ;;  %s1867_s11 = int_to_ptr.hbm [resolvable:$true] %s1866_s11 }
  0xbc   : > { %v701_v44 = vadd.f32 %v685_v30, %v642_v35  ;;  %v2356_v30 = vld [vmem:[#allocation2 + $0x4b] sm:$0xff]  ;;  %v503_v35 = vadd.f32 %v2237_v4, %v487_v9  ;;  %3699 = vst [vmem:[#allocation33_spill] sm:$0xff] %v2367_v42  ;;  %v2379_v9 = vld [vmem:[#allocation6 + $0x9] ss:$0 sm:$0xff]  ;;  %s1868_s23 = scalar_lea.hbm %s1867_s11, 128  ;;  %p1873_p8 = scmp.lt.s32.totalorder %s1867_s11, %s3960_s30 }
  0xbd   : > { %3698 = vst [vmem:[#allocation32_spill] sm:$0xff] %v2356_v30  ;;  %v2399_v62 = vmul.f32 %v2338_v22, %v2356_v30  ;;  %v2417_v30 = vld [vmem:[#allocation2 + $0x1c] sm:$0xff]  ;;  %p1869_p3 = scmp.ne.s32.totalorder %s1867_s11, %s1868_s23  ;;  %p1874_p9 = scmp.lt.s32.totalorder %s1872_s7, %s1868_s23 }
  0xbe   : > { %v736_v57 = vadd.f32 %v720_v36, %v701_v44  ;;  %v557_v36 = vmul.f32 %v2243_v8, %v2340_v23  ;;  %v2369_v44 = vld [vmem:[#allocation6 + $0x4] ss:$0 sm:$0xff]  ;;  %3701 = vst [vmem:[#allocation35_spill] sm:$0xff] %v2379_v9  ;;  %v538_v21 = vadd.f32 %v522_v11, %v503_v35  ;;  %v2403_v11 = vld [vmem:[#allocation2 + $0x68] sm:$0xff] }
  0xbf   : > { %3702 = vst [vmem:[#allocation36_spill] sm:$0xff] %v2387_v41  ;;  %v659_v35 = vld [vmem:[#allocation2 + $0x9] sm:$0xff]  ;;  %v627_v13 = vmul.f32 %v2251_v15, %v2403_v11  ;;  %v2422_v29 = vmul.f32 %v2369_v44, %v1255_v43  ;;  %p1870_p5 = pnand %p1869_p3, %p2080_p6  ;;  %p1875_p12 = por %p1874_p9, %p1873_p8 }
  0xc0   : > { %v771_v14 = vadd.f32 %v755_v45, %v736_v57  ;;  %v2371_v45 = vld [vmem:[#allocation2 + $0x50] sm:$0xff]  ;;  %v2377_v57 = vmul.f32 %v2323_v3, %v1056_v2  ;;  %3703 = vst [vmem:[#allocation37_spill] sm:$0xff] %v2399_v62  ;;  %v2401_v2 = vld [vmem:[#allocation6 + $0x18] ss:$0 sm:$0xff]  ;;  %v573_v56 = vadd.f32 %v557_v36, %v538_v21  ;;  %v2428_v36 = vmul.f32 %v2298_v52, %v2308_v59 }
  0xc1   : > { %3700 = vst [vmem:[#allocation34_spill] sm:$0xff] %v2371_v45  ;;  %v592_v17 = vmul.f32 %v2246_v10, %v2371_v45  ;;  %v2419_v62 = vld [vmem:[#allocation2 + $0x34] sm:$0xff]  ;;  %v686_v58 = vmul.f32 %v2258_v20, %v659_v35  ;;  %v489_v35 = vmul.f32 %v2239_v5, %v2312_v61  ;;  %v559_v61 = vmul.f32 %v2243_v8, %v2371_v45  ;;  %p1871_p7 = pneg %p1870_p5 }
  0xc2   : > { %v806_v37 = vadd.f32 %v790_v49, %v771_v14  ;;  %v2381_v49 = vld [vmem:[#allocation6 + $0xe] ss:$0 sm:$0xff]  ;;  %v2383_v14 = vld [vmem:[#allocation6 + $0x13] ss:$0 sm:$0xff]  ;;  %3704 = vst [vmem:[#allocation38_spill] sm:$0xff] %v2403_v11  ;;  %v2485_v5 = vld [vmem:[#allocation2 + $0x79] sm:$0xff] }
  0xc3   : > { %3707 = vst [vmem:[#allocation41_spill] sm:$0xff] %v2415_v39  ;;  %v608_v43 = vadd.f32 %v592_v17, %v573_v56  ;;  %v2451_v39 = vld [vmem:[#allocation2 + $0x39] sm:$0xff]  ;;  %p1876_p13 = pnand %p1875_p12, %p1871_p7 }
  0xc4   : > { %v841_v40 = vadd.f32 %v825_v50, %v806_v37  ;;  %v2407_v50 = vmul.f32 %v2358_v32, %v2367_v42  ;;  %v2411_v37 = vld [vmem:[#allocation2 + $0x78] sm:$0xff]  ;;  %3708 = vst [vmem:[#allocation42_spill] sm:$0xff] %v2417_v30  ;;  %v2430_v42 = vld [vmem:[#allocation2 + $0x4c] sm:$0xff] }
  0xc5   : > { %3706 = vst [vmem:[#allocation40_spill] sm:$0xff] %v2411_v37  ;;  %v628_v21 = vmul.f32 %v2251_v15, %v2411_v37  ;;  %v2445_v59 = vmul.f32 %v2383_v14, %v2430_v42 }
  0xc6   : > { %3705 = vst [vmem:[#allocation39_spill] sm:$0xff] %v2407_v50  ;;  %v900_v41 = vadd.f32 %v884_v16, %v841_v40  ;;  %v2432_v50 = vld [vmem:[#allocation2 + $0x64] sm:$0xff]  ;;  %v2436_v40 = vmul.f32 %v2379_v9, %v2417_v30  ;;  %v2440_v16 = vmul.f32 %v2381_v49, %v2419_v62  ;;  %v2453_v9 = vld [vmem:[#allocation2 + $0x51] sm:$0xff] }
  0xc7   : > { %3709 = vst [vmem:[#allocation43_spill] sm:$0xff] %v2419_v62  ;;  %v644_v30 = vadd.f32 %v628_v21, %v609_v46  ;;  %v505_v62 = vadd.f32 %v2237_v4, %v489_v35  ;;  %v1057_v4 = vld [vmem:[#allocation2 + $0xb] sm:$0xff] }
  0xc8   : > { %3710 = vst [vmem:[#allocation44_spill] sm:$0xff] %v2422_v29  ;;  %v935_v37 = vadd.f32 %v919_v18, %v900_v41  ;;  %v2449_v29 = vmul.f32 %v2401_v2, %v2432_v50  ;;  %v756_v41 = vmul.f32 %v2270_v31, %v2451_v39  ;;  %v858_v18 = vld [vmem:[#allocation2 + $0xa] sm:$0xff] }
  0xc9   : > { %3711 = vst [vmem:[#allocation45_spill] sm:$0xff] %v2428_v36  ;;  %v661_v36 = vld [vmem:[#allocation2 + $0x21] sm:$0xff]  ;;  %v703_v46 = vadd.f32 %v2315_v63, %v644_v30  ;;  %v885_v63 = vmul.f32 %v2290_v47, %v858_v18 }
  0xca   : > { %3712 = vst [vmem:[#allocation46_spill] sm:$0xff] %v2430_v42  ;;  %v721_v17 = vmul.f32 %v2264_v25, %v661_v36  ;;  %v970_v56 = vadd.f32 %v954_v26, %v935_v37  ;;  %v2460_v42 = vld [vmem:[#allocation2 + $0x69] sm:$0xff]  ;;  %v2475_v37 = vld [vmem:[#allocation2 + $0x3a] sm:$0xff] }
  0xcb   : > { %3713 = vst [vmem:[#allocation47_spill] sm:$0xff] %v2432_v50  ;;  %v791_v50 = vmul.f32 %v2272_v33, %v2453_v9  ;;  %v955_v35 = vmul.f32 %v2298_v52, %v2475_v37 }
  0xcc   : > { %3714 = vst [vmem:[#allocation48_spill] sm:$0xff] %v2436_v40  ;;  %v643_v40 = vadd.f32 %v627_v13, %v608_v43  ;;  %v524_v13 = vmul.f32 %v2241_v7, %v2340_v23  ;;  %v826_v43 = vmul.f32 %v2274_v34, %v2460_v42  ;;  %v1005_v26 = vadd.f32 %v2350_v27, %v970_v56  ;;  %v2481_v7 = vld [vmem:[#allocation2 + $0x52] sm:$0xff]  ;;  %v2490_v56 = vld [vmem:[#allocation2 + $0x6a] sm:$0xff]  ;;  %v2510_v23 = vld [vmem:[#allocation2 + $0x3b] sm:$0xff] }
  0xcd   : > { %3715 = vst [vmem:[#allocation49_spill] sm:$0xff] %v2449_v29  ;;  %v2469_v29 = vld [vmem:[#allocation2 + $0x22] sm:$0xff]  ;;  %v594_v27 = vmul.f32 %v2246_v10, %v2403_v11 }
  0xce   : > { %3716 = vst [vmem:[#allocation50_spill] sm:$0xff] %v2451_v39  ;;  %v702_v21 = vadd.f32 %v686_v58, %v643_v40  ;;  %v920_v30 = vmul.f32 %v2292_v48, %v2469_v29  ;;  %v738_v58 = vadd.f32 %v2319_v0, %v703_v46  ;;  %v540_v8 = vadd.f32 %v524_v13, %v505_v62  ;;  %v2505_v13 = vld [vmem:[#allocation2 + $0x23] sm:$0xff] }
  0xcf   : > { %3717 = vst [vmem:[#allocation51_spill] sm:$0xff] %v2453_v9  ;;  %v1040_v18 = vadd.f32 %v2365_v38, %v1005_v26  ;;  %v2494_v0 = vmul.f32 %v2300_v53, %v2481_v7  ;;  %v827_v46 = vmul.f32 %v2274_v34, %v2485_v5  ;;  %v2503_v62 = vmul.f32 %v2310_v60, %v2490_v56 }
  0xd0   : > { %3718 = vst [vmem:[#allocation52_spill] sm:$0xff] %v2460_v42  ;;  %v737_v40 = vadd.f32 %v721_v17, %v702_v21  ;;  %v773_v17 = vadd.f32 %v2332_v12, %v738_v58  ;;  %v2499_v21 = vld [vmem:[#allocation2 + $0x80] sm:$0xff]  ;;  %v575_v38 = vadd.f32 %v559_v61, %v540_v8  ;;  %v2513_v12 = vmul.f32 %v2323_v3, %v1057_v4  ;;  %v2522_v8 = vld [vmem:[#allocation2 + $0x6b] sm:$0xff] }
  0xd1   : > { %3719 = vst [vmem:[#allocation53_spill] sm:$0xff] %v2485_v5  ;;  %v629_v26 = vmul.f32 %v2251_v15, %v2499_v21  ;;  %v1099_v11 = vadd.f32 %v2377_v57, %v1040_v18  ;;  %v2520_v5 = vld [vmem:[#allocation2 + $0x53] sm:$0xff]  ;;  %v2526_v61 = vmul.f32 %v2336_v19, %v2510_v23  ;;  %v688_v18 = vmul.f32 %v2258_v20, %v661_v36 }
  0xd2   : > { %3720 = vst [vmem:[#allocation54_spill] sm:$0xff] %v2490_v56  ;;  %v772_v45 = vadd.f32 %v756_v41, %v737_v40  ;;  %v2517_v41 = vmul.f32 %v2325_v6, %v2505_v13  ;;  %v808_v58 = vadd.f32 %v2344_v24, %v773_v17  ;;  %v610_v57 = vadd.f32 %v594_v27, %v575_v38  ;;  %v1256_v17 = vld [vmem:[#allocation2 + $0xc] sm:$0xff] }
  0xd3   : > { %3721 = vst [vmem:[#allocation55_spill] sm:$0xff] %v2499_v21  ;;  %v1134_v4 = vadd.f32 %v2391_v51, %v1099_v11  ;;  %v2532_v21 = vmul.f32 %v2338_v22, %v2520_v5  ;;  %v2536_v24 = vmul.f32 %v2358_v32, %v2522_v8  ;;  %v991_v27 = vmul.f32 %v2300_v53, %v2321_v1  ;;  %v2555_v1 = vld [vmem:[#allocation2 + $0x24] sm:$0xff] }
  0xd4   : > { %3722 = vst [vmem:[#allocation56_spill] sm:$0xff] %v2505_v13  ;;  %v807_v40 = vadd.f32 %v791_v50, %v772_v45  ;;  %v843_v45 = vadd.f32 %v827_v46, %v808_v58  ;;  %v2538_v13 = vld [vmem:[#allocation2 + $0x7a] sm:$0xff]  ;;  %v645_v38 = vadd.f32 %v629_v26, %v610_v57  ;;  %v723_v51 = vmul.f32 %v2264_v25, %v2451_v39  ;;  %v3727_v58 = vld [vmem:[#allocation31_spill] sm:$0xff]  ;;  %v3728_v57 = vld [vmem:[#allocation37_spill] sm:$0xff] }
  0xd5   : > { %3723 = vst [vmem:[#allocation57_spill] sm:$0xff] %v2510_v23  ;;  %v1169_v11 = vadd.f32 %v2395_v55, %v1134_v4  ;;  %v758_v26 = vmul.f32 %v2270_v31, %v2453_v9  ;;  %v3730_v55 = vld [vmem:[#allocation41_spill] sm:$0xff] }
  0xd6   : > { %3724 = vst [vmem:[#allocation58_spill] sm:$0xff] %v2520_v5  ;;  %v842_v50 = vadd.f32 %v826_v43, %v807_v40  ;;  %v902_v36 = vadd.f32 %v2374_v54, %v843_v45  ;;  %v1085_v43 = vmul.f32 %v2323_v3, %v2352_v28  ;;  %v1120_v40 = vmul.f32 %v2325_v6, %v3727_v58  ;;  %v3731_v45 = vld [vmem:[#allocation32_spill] sm:$0xff] }
  0xd7   : > { %3725 = vst [vmem:[#allocation59_spill] sm:$0xff] %v2522_v8  ;;  %v1026_v8 = vmul.f32 %v2310_v60, %v2538_v13  ;;  %v704_v5 = vadd.f32 %v688_v18, %v645_v38  ;;  %v1204_v39 = vadd.f32 %v3728_v57, %v1169_v11  ;;  %v2558_v54 = vmul.f32 %v2369_v44, %v1256_v17  ;;  %v3733_v18 = vld [vmem:[#allocation35_spill] sm:$0xff] }
  0xd8   : > { %3726 = vst [vmem:[#allocation60_spill] sm:$0xff] %v2538_v13  ;;  %v901_v46 = vadd.f32 %v885_v63, %v842_v50  ;;  %v937_v4 = vadd.f32 %v3730_v55, %v902_v36  ;;  %v1155_v28 = vmul.f32 %v2336_v19, %v3731_v45  ;;  %v2563_v50 = vld [vmem:[#allocation2 + $0x3c] sm:$0xff]  ;;  %v2567_v38 = vmul.f32 %v3733_v18, %v2555_v1  ;;  %v3737_v36 = vld [vmem:[#allocation45_spill] sm:$0xff] }
  0xd9   : > { %3729 = vst [vmem:[#allocation37_spill] sm:$0xff] %v2555_v1  ;;  %v739_v9 = vadd.f32 %v723_v51, %v704_v5  ;;  %v793_v11 = vmul.f32 %v2272_v33, %v2460_v42  ;;  %v3735_v57 = vld [vmem:[#allocation39_spill] sm:$0xff]  ;;  %v2574_v17 = vmul.f32 %v2381_v49, %v2563_v50  ;;  %v2583_v5 = vld [vmem:[#allocation2 + $0x54] sm:$0xff]  ;;  %v3742_v42 = vld [vmem:[#allocation44_spill] sm:$0xff] }
  0xda   : > { %v936_v63 = vadd.f32 %v920_v30, %v901_v46  ;;  %3732 = vst [vmem:[#allocation41_spill] sm:$0xff] %v2563_v50  ;;  %v1239_v58 = vadd.f32 %v3735_v57, %v1204_v39  ;;  %v972_v55 = vadd.f32 %v3737_v36, %v937_v4  ;;  %v2577_v45 = vld [vmem:[#allocation2 + $0x7b] sm:$0xff]  ;;  %v3739_v30 = vld [vmem:[#allocation33_spill] sm:$0xff]  ;;  %v2592_v4 = vmul.f32 %v2383_v14, %v2583_v5 }
  0xdb   : > { %3734 = vst [vmem:[#allocation35_spill] sm:$0xff] %v2567_v38  ;;  %v1190_v46 = vmul.f32 %v2338_v22, %v3739_v30  ;;  %v2581_v13 = vld [vmem:[#allocation2 + $0x81] sm:$0xff]  ;;  %v1225_v51 = vmul.f32 %v2358_v32, %v2577_v45  ;;  %v774_v39 = vadd.f32 %v758_v26, %v739_v9  ;;  %v2594_v30 = vld [vmem:[#allocation2 + $0x90] sm:$0xff]  ;;  %v887_v9 = vmul.f32 %v2290_v47, %v2469_v29 }
  0xdc   : > { %3736 = vst [vmem:[#allocation39_spill] sm:$0xff] %v2574_v17  ;;  %v971_v1 = vadd.f32 %v955_v35, %v936_v63  ;;  %v828_v57 = vmul.f32 %v2274_v34, %v2581_v13  ;;  %v1298_v50 = vadd.f32 %v3742_v42, %v1239_v58  ;;  %v1007_v36 = vadd.f32 %v991_v27, %v972_v55  ;;  %v3745_v17 = vld [vmem:[#allocation40_spill] sm:$0xff] }
  0xdd   : > { %3738 = vst [vmem:[#allocation45_spill] sm:$0xff] %v2577_v45  ;;  %v595_v35 = vmul.f32 %v2246_v10, %v3745_v17  ;;  %v809_v38 = vadd.f32 %v793_v11, %v774_v39  ;;  %v630_v26 = vmul.f32 %v2251_v15, %v2594_v30  ;;  %v3746_v42 = vld [vmem:[#allocation48_spill] sm:$0xff]  ;;  %v3749_v17 = vld [vmem:[#allocation42_spill] sm:$0xff]  ;;  %v922_v29 = vmul.f32 %v2292_v48, %v2475_v37 }
  0xde   : > { %3740 = vst [vmem:[#allocation61_spill] sm:$0xff] %v2581_v13  ;;  %v1006_v63 = vadd.f32 %v2494_v0, %v971_v1  ;;  %v1333_v58 = vadd.f32 %v3746_v42, %v1298_v50  ;;  %v1042_v45 = vadd.f32 %v1026_v8, %v1007_v36  ;;  %v3747_v13 = vld [vmem:[#allocation36_spill] sm:$0xff]  ;;  %v1284_v1 = vmul.f32 %v2369_v44, %v3749_v17  ;;  %v3751_v36 = vld [vmem:[#allocation25_spill] sm:$0xff]  ;;  %v3752_v42 = vld [vmem:[#allocation26_spill] sm:$0xff] }
  0xdf   : > { %3741 = vst [vmem:[#allocation62_spill] sm:$0xff] %v2583_v5  ;;  %v611_v5 = vadd.f32 %v595_v35, %v3747_v13  ;;  %v3748_v27 = vld [vmem:[#allocation24_spill] sm:$0xff]  ;;  %v844_v0 = vadd.f32 %v828_v57, %v809_v38  ;;  %v724_v13 = vmul.f32 %v2264_v25, %v3751_v36  ;;  %v957_v38 = vmul.f32 %v2298_v52, %v2481_v7 }
  0xe0   : > { %3743 = vst [vmem:[#allocation44_spill] sm:$0xff] %v2592_v4  ;;  %v689_v55 = vmul.f32 %v2258_v20, %v3748_v27  ;;  %v1041_v4 = vadd.f32 %v2503_v62, %v1006_v63  ;;  %v1368_v11 = vadd.f32 %v2440_v16, %v1333_v58  ;;  %v2613_v39 = vld [vmem:[#allocation2 + $0x6c] sm:$0xff]  ;;  %v1101_v50 = vadd.f32 %v1085_v43, %v1042_v45  ;;  %v2678_v36 = vld [vmem:[#allocation2 + $0x83] sm:$0xff] }
  0xe1   : > { %3744 = vst [vmem:[#allocation63_spill] sm:$0xff] %v2594_v30  ;;  %v646_v8 = vadd.f32 %v630_v26, %v611_v5  ;;  %v2620_v62 = vmul.f32 %v2401_v2, %v2613_v39  ;;  %v903_v17 = vadd.f32 %v887_v9, %v844_v0  ;;  %v759_v43 = vmul.f32 %v2270_v31, %v3752_v42  ;;  %v3753_v5 = vld [vmem:[#allocation43_spill] sm:$0xff]  ;;  %v3754_v26 = vld [vmem:[#allocation49_spill] sm:$0xff] }
  0xe2   : > { %3750 = vst [vmem:[#allocation48_spill] sm:$0xff] %v2613_v39  ;;  %v1100_v35 = vadd.f32 %v2513_v12, %v1041_v4  ;;  %v1403_v57 = vadd.f32 %v2445_v59, %v1368_v11  ;;  %v1136_v16 = vadd.f32 %v1120_v40, %v1101_v50  ;;  %v1319_v12 = vmul.f32 %v3733_v18, %v3753_v5  ;;  %v2633_v0 = vld [vmem:[#allocation2 + $0x82] sm:$0xff]  ;;  %v3756_v40 = vld [vmem:[#allocation53_spill] sm:$0xff]  ;;  %v3757_v50 = vld [vmem:[#allocation46_spill] sm:$0xff] }
  0xe3   : > { %v705_v63 = vadd.f32 %v689_v55, %v646_v8  ;;  %v938_v4 = vadd.f32 %v922_v29, %v903_v17  ;;  %v992_v9 = vmul.f32 %v2300_v53, %v2490_v56  ;;  %3755 = vst [vmem:[#allocation36_spill] sm:$0xff] %v2633_v0  ;;  %v794_v55 = vmul.f32 %v2272_v33, %v3756_v40  ;;  %v3762_v40 = vld [vmem:[#allocation27_spill] sm:$0xff] }
  0xe4   : > { %v1135_v45 = vadd.f32 %v2517_v41, %v1100_v35  ;;  %v1438_v58 = vadd.f32 %v3754_v26, %v1403_v57  ;;  %v1171_v27 = vadd.f32 %v1155_v28, %v1136_v16  ;;  %v1354_v41 = vmul.f32 %v2381_v49, %v3757_v50  ;;  %v2642_v35 = vld [vmem:[#allocation2 + $0x91] sm:$0xff]  ;;  %v2645_v28 = vld [vmem:[#allocation2 + $0x7c] sm:$0xff]  ;;  %3775 = vst [vmem:[#allocation43_spill] sm:$0xff] %v2678_v36 }
  0xe5   : > { %v740_v59 = vadd.f32 %v724_v13, %v705_v63  ;;  %v973_v8 = vadd.f32 %v957_v38, %v938_v4  ;;  %v1027_v29 = vmul.f32 %v2310_v60, %v2633_v0  ;;  %3758 = vst [vmem:[#allocation24_spill] sm:$0xff] %v2642_v35  ;;  %v3760_v57 = vld [vmem:[#allocation47_spill] sm:$0xff]  ;;  %v1424_v38 = vmul.f32 %v2401_v2, %v2645_v28  ;;  %v3761_v4 = vld [vmem:[#allocation56_spill] sm:$0xff]  ;;  %v3763_v0 = vld [vmem:[#allocation58_spill] sm:$0xff] }
  0xe6   : > { %v1170_v11 = vadd.f32 %v2526_v61, %v1135_v45  ;;  %1454 = vst [vmem:[%s2154_s25] sm:$0xff] %v1438_v58  ;;  %v1206_v17 = vadd.f32 %v1190_v46, %v1171_v27  ;;  %v1389_v13 = vmul.f32 %v2383_v14, %v3760_v57  ;;  %v829_v61 = vmul.f32 %v2274_v34, %v2642_v35  ;;  %v3769_v57 = vld [vmem:[#allocation18_spill] sm:$0xff]  ;;  %v3772_v56 = vld [vmem:[#allocation59_spill] sm:$0xff] }
  0xe7   : > { %3759 = vst [vmem:[#allocation42_spill] sm:$0xff] %v2645_v28  ;;  %v775_v16 = vadd.f32 %v759_v43, %v740_v59  ;;  %v1008_v45 = vadd.f32 %v992_v9, %v973_v8  ;;  %v1086_v26 = vmul.f32 %v2323_v3, %v3761_v4  ;;  %v1121_v46 = vmul.f32 %v2325_v6, %v2510_v23  ;;  %v3765_v28 = vld [vmem:[#allocation19_spill] sm:$0xff]  ;;  %v3766_v4 = vld [vmem:[#allocation28_spill] sm:$0xff] }
  0xe8   : > { %v1205_v63 = vadd.f32 %v2532_v21, %v1170_v11  ;;  %v1241_v58 = vadd.f32 %v1225_v51, %v1206_v17  ;;  %v888_v43 = vmul.f32 %v2290_v47, %v3762_v40  ;;  %v1156_v21 = vmul.f32 %v2336_v19, %v3763_v0  ;;  %v3764_v11 = vld [vmem:[#allocation30_spill] sm:$0xff]  ;;  %v3768_v23 = vld [vmem:[#allocation20_spill] sm:$0xff] }
  0xe9   : > { %v810_v27 = vadd.f32 %v794_v55, %v775_v16  ;;  %v1043_v35 = vadd.f32 %v1027_v29, %v1008_v45  ;;  %v491_v9 = vmul.f32 %v3765_v28, %v3764_v11  ;;  %v923_v51 = vmul.f32 %v2292_v48, %v3766_v4  ;;  %v3767_v17 = vld [vmem:[#allocation34_spill] sm:$0xff] }
  0xea   : > { %v1240_v59 = vadd.f32 %v2536_v24, %v1205_v63  ;;  %v1300_v8 = vadd.f32 %v1284_v1, %v1241_v58  ;;  %v526_v55 = vmul.f32 %v3768_v23, %v3767_v17  ;;  %v3770_v29 = vld [vmem:[#allocation38_spill] sm:$0xff]  ;;  %v3771_v63 = vld [vmem:[#allocation21_spill] sm:$0xff]  ;;  %v1191_v11 = vmul.f32 %v2338_v22, %v3772_v56 }
  0xeb   : > { %v845_v42 = vadd.f32 %v829_v61, %v810_v27  ;;  %v1102_v40 = vadd.f32 %v1086_v26, %v1043_v35  ;;  %v507_v24 = vadd.f32 %v3769_v57, %v491_v9  ;;  %v561_v45 = vmul.f32 %v3771_v63, %v3770_v29  ;;  %v3773_v61 = vld [vmem:[#allocation29_spill] sm:$0xff]  ;;  %v3774_v27 = vld [vmem:[#allocation35_spill] sm:$0xff] }
  0xec   : > { %v1299_v16 = vadd.f32 %v2558_v54, %v1240_v59  ;;  %v1335_v0 = vadd.f32 %v1319_v12, %v1300_v8  ;;  %v958_v58 = vmul.f32 %v2298_v52, %v3773_v61  ;;  %v3776_v35 = vld [vmem:[#allocation55_spill] sm:$0xff]  ;;  %v1226_v12 = vmul.f32 %v2358_v32, %v2678_v36  ;;  %v3777_v8 = vld [vmem:[#allocation60_spill] sm:$0xff] }
  0xed   : > { %v904_v1 = vadd.f32 %v888_v43, %v845_v42  ;;  %v1137_v17 = vadd.f32 %v1121_v46, %v1102_v40  ;;  %v542_v54 = vadd.f32 %v526_v55, %v507_v24  ;;  %v596_v26 = vmul.f32 %v2246_v10, %v3776_v35  ;;  %v2686_v43 = vld [vmem:[#allocation2 + $0x98] sm:$0xff]  ;;  %v3779_v61 = vld [vmem:[#allocation39_spill] sm:$0xff] }
  0xee   : > { %v1334_v4 = vadd.f32 %v3774_v27, %v1299_v16  ;;  %v1370_v59 = vadd.f32 %v1354_v41, %v1335_v0  ;;  %v993_v42 = vmul.f32 %v2300_v53, %v3777_v8  ;;  %3778 = vst [vmem:[#allocation49_spill] sm:$0xff] %v2686_v43  ;;  %v2689_v27 = vld [vmem:[#allocation2 + $0x92] sm:$0xff]  ;;  %v631_v55 = vmul.f32 %v2251_v15, %v2686_v43  ;;  %v3785_v36 = vld [vmem:[#allocation31_spill] sm:$0xff] }
  0xef   : > { %v939_v9 = vadd.f32 %v923_v51, %v904_v1  ;;  %v1172_v16 = vadd.f32 %v1156_v21, %v1137_v17  ;;  %3780 = vst [vmem:[#allocation56_spill] sm:$0xff] %v2689_v27  ;;  %v577_v46 = vadd.f32 %v561_v45, %v542_v54  ;;  %v3781_v0 = vld [vmem:[#allocation37_spill] sm:$0xff]  ;;  %v1028_v24 = vmul.f32 %v2310_v60, %v2689_v27  ;;  %v3782_v1 = vld [vmem:[#allocation44_spill] sm:$0xff]  ;;  %v3783_v17 = vld [vmem:[#allocation50_spill] sm:$0xff] }
  0xf0   : > { %v1369_v56 = vadd.f32 %v3779_v61, %v1334_v4  ;;  %v1405_v40 = vadd.f32 %v1389_v13, %v1370_v59  ;;  %v1285_v41 = vmul.f32 %v2369_v44, %v3781_v0  ;;  %v690_v45 = vmul.f32 %v2258_v20, %v3783_v17  ;;  %v3784_v54 = vld [vmem:[#allocation41_spill] sm:$0xff]  ;;  %v3786_v43 = vld [vmem:[#allocation51_spill] sm:$0xff] }
  0xf1   : > { %v974_v51 = vadd.f32 %v958_v58, %v939_v9  ;;  %v1207_v4 = vadd.f32 %v1191_v11, %v1172_v16  ;;  %v612_v21 = vadd.f32 %v596_v26, %v577_v46  ;;  %v1320_v13 = vmul.f32 %v3733_v18, %v3784_v54  ;;  %v3787_v26 = vld [vmem:[#allocation32_spill] sm:$0xff]  ;;  %v3788_v46 = vld [vmem:[#allocation62_spill] sm:$0xff] }
  0xf2   : > { %v1404_v8 = vadd.f32 %v3782_v1, %v1369_v56  ;;  %v1440_v61 = vadd.f32 %v1424_v38, %v1405_v40  ;;  %v1087_v0 = vmul.f32 %v2323_v3, %v3785_v36  ;;  %v725_v56 = vmul.f32 %v2264_v25, %v3786_v43 }
  0xf3   : > { %v1009_v59 = vadd.f32 %v993_v42, %v974_v51  ;;  %v1242_v9 = vadd.f32 %v1226_v12, %v1207_v4  ;;  %v647_v27 = vadd.f32 %v631_v55, %v612_v21  ;;  %v1122_v16 = vmul.f32 %v2325_v6, %v3787_v26  ;;  %v3789_v51 = vld [vmem:[#allocation52_spill] sm:$0xff] }
  0xf4   : > { %v1439_v58 = vadd.f32 %v2620_v62, %v1404_v8  ;;  %1456 = vst [vmem:[%s2154_s25 + $0x10] sm:$0xff] %v1440_v61  ;;  %v1355_v42 = vmul.f32 %v2381_v49, %v3788_v46  ;;  %v760_v36 = vmul.f32 %v2270_v31, %v3789_v51  ;;  %v1390_v62 = vmul.f32 %v2383_v14, %v2613_v39  ;;  %v3790_v8 = vld [vmem:[#allocation33_spill] sm:$0xff]  ;;  %v3793_v61 = vld [vmem:[#allocation23_spill] sm:$0xff] }
  0xf5   : > { %v1044_v11 = vadd.f32 %v1028_v24, %v1009_v59  ;;  %v1301_v38 = vadd.f32 %v1285_v41, %v1242_v9  ;;  %v706_v40 = vadd.f32 %v690_v45, %v647_v27  ;;  %v1157_v55 = vmul.f32 %v2336_v19, %v3790_v8  ;;  %v3791_v24 = vld [vmem:[#allocation22_spill] sm:$0xff]  ;;  %v3792_v41 = vld [vmem:[#allocation61_spill] sm:$0xff]  ;;  %v2725_v45 = vld [vmem:[#allocation2 + $0x84] sm:$0xff] }
  0xf6   : > { %1455 = vst [vmem:[%s2154_s25 + $0x8] sm:$0xff] %v1439_v58  ;;  %v492_v1 = vmul.f32 %v3765_v28, %v3791_v24  ;;  %v795_v17 = vmul.f32 %v2272_v33, %v3792_v41  ;;  %v527_v27 = vmul.f32 %v3768_v23, %v3793_v61  ;;  %v3795_v58 = vld [vmem:[#allocation45_spill] sm:$0xff]  ;;  %v3797_v8 = vld [vmem:[#allocation40_spill] sm:$0xff] }
  0xf7   : > { %v1103_v12 = vadd.f32 %v1087_v0, %v1044_v11  ;;  %v1336_v4 = vadd.f32 %v1320_v13, %v1301_v38  ;;  %v741_v21 = vadd.f32 %v725_v56, %v706_v40  ;;  %3794 = vst [vmem:[#allocation27_spill] sm:$0xff] %v2725_v45  ;;  %v1192_v0 = vmul.f32 %v2338_v22, %v3795_v58  ;;  %v2729_v9 = vld [vmem:[#allocation2 + $0x99] sm:$0xff] }
  0xf8   : > { %3796 = vst [vmem:[#allocation30_spill] sm:$0xff] %v2729_v9  ;;  %v508_v11 = vadd.f32 %v3769_v57, %v492_v1  ;;  %v562_v13 = vmul.f32 %v3771_v63, %v3797_v8  ;;  %v1425_v38 = vmul.f32 %v2401_v2, %v2725_v45  ;;  %v2736_v40 = vld [vmem:[#allocation2 + $0x93] sm:$0xff]  ;;  %v597_v1 = vmul.f32 %v2246_v10, %v2594_v30  ;;  %v2746_v45 = vld [vmem:[#allocation2 + $0xa8] sm:$0xff] }
  0xf9   : > { %v1138_v59 = vadd.f32 %v1122_v16, %v1103_v12  ;;  %v1371_v56 = vadd.f32 %v1355_v42, %v1336_v4  ;;  %3798 = vst [vmem:[#allocation19_spill] sm:$0xff] %v2736_v40  ;;  %v776_v24 = vadd.f32 %v760_v36, %v741_v21  ;;  %v830_v16 = vmul.f32 %v2274_v34, %v2729_v9 }
  0xfa   : > { %v1227_v58 = vmul.f32 %v2358_v32, %v2736_v40  ;;  %v543_v26 = vadd.f32 %v527_v27, %v508_v11  ;;  %v889_v4 = vmul.f32 %v2290_v47, %v2475_v37  ;;  %3799 = vst [vmem:[#allocation20_spill] sm:$0xff] %v2746_v45  ;;  %v1286_v21 = vmul.f32 %v2369_v44, %v3753_v5  ;;  %v3801_v5 = vld [vmem:[#allocation54_spill] sm:$0xff] }
  0xfb   : > { %v1173_v12 = vadd.f32 %v1157_v55, %v1138_v59  ;;  %v1406_v8 = vadd.f32 %v1390_v62, %v1371_v56  ;;  %v811_v42 = vadd.f32 %v795_v17, %v776_v24  ;;  %v632_v59 = vmul.f32 %v2251_v15, %v2746_v45  ;;  %v3800_v56 = vld [vmem:[#allocation25_spill] sm:$0xff] }
  0xfc   : > { %v578_v55 = vadd.f32 %v562_v13, %v543_v26  ;;  %v924_v40 = vmul.f32 %v2292_v48, %v2481_v7  ;;  %v1321_v17 = vmul.f32 %v3733_v18, %v3757_v50  ;;  %v959_v26 = vmul.f32 %v2298_v52, %v3801_v5  ;;  %v2771_v50 = vld [vmem:[#allocation2 + $0x9a] sm:$0xff] }
  0xfd   : > { %v1208_v36 = vadd.f32 %v1192_v0, %v1173_v12  ;;  %v1441_v27 = vadd.f32 %v1425_v38, %v1406_v8  ;;  %v846_v11 = vadd.f32 %v830_v16, %v811_v42  ;;  %v691_v0 = vmul.f32 %v2258_v20, %v3800_v56  ;;  %v3802_v12 = vld [vmem:[#allocation47_spill] sm:$0xff]  ;;  %v3803_v16 = vld [vmem:[#allocation26_spill] sm:$0xff]  ;;  %3807 = vst [vmem:[#allocation18_spill] sm:$0xff] %v2771_v50 }
  0xfe   : > { %v613_v37 = vadd.f32 %v597_v1, %v578_v55  ;;  %v1356_v8 = vmul.f32 %v2381_v49, %v3802_v12  ;;  %v3804_v42 = vld [vmem:[#allocation42_spill] sm:$0xff]  ;;  %v3805_v55 = vld [vmem:[#allocation36_spill] sm:$0xff] }
  0xff   : > { %v1243_v62 = vadd.f32 %v1227_v58, %v1208_v36  ;;  %1457 = vst [vmem:[%s2154_s25 + $0x18] sm:$0xff] %v1441_v27  ;;  %v905_v24 = vadd.f32 %v889_v4, %v846_v11  ;;  %v726_v58 = vmul.f32 %v2264_v25, %v3803_v16  ;;  %v1391_v36 = vmul.f32 %v2383_v14, %v3804_v42  ;;  %v3806_v27 = vld [vmem:[#allocation34_spill] sm:$0xff]  ;;  %v3813_v16 = vld [vmem:[#allocation49_spill] sm:$0xff] }
 0x100   : > { %v648_v38 = vadd.f32 %v632_v59, %v613_v37  ;;  %v994_v56 = vmul.f32 %v2300_v53, %v3805_v55  ;;  %v493_v4 = vmul.f32 %v3765_v28, %v3806_v27  ;;  %v528_v37 = vmul.f32 %v3768_v23, %v3770_v29  ;;  %v2777_v12 = vld [vmem:[#allocation2 + $0x94] sm:$0xff]  ;;  %v3810_v27 = vld [vmem:[#allocation24_spill] sm:$0xff] }
 0x101   : > { %v1302_v13 = vadd.f32 %v1286_v21, %v1243_v62  ;;  %v940_v1 = vadd.f32 %v924_v40, %v905_v24  ;;  %v3808_v62 = vld [vmem:[#allocation53_spill] sm:$0xff]  ;;  %3809 = vst [vmem:[#allocation21_spill] sm:$0xff] %v2777_v12  ;;  %v1029_v40 = vmul.f32 %v2310_v60, %v2771_v50 }
 0x102   : > { %v707_v21 = vadd.f32 %v691_v0, %v648_v38  ;;  %v761_v59 = vmul.f32 %v2270_v31, %v3808_v62  ;;  %v509_v24 = vadd.f32 %v3769_v57, %v493_v4  ;;  %v1426_v0 = vmul.f32 %v2401_v2, %v2777_v12  ;;  %v3811_v55 = vld [vmem:[#allocation57_spill] sm:$0xff]  ;;  %v3815_v12 = vld [vmem:[#allocation58_spill] sm:$0xff] }
 0x103   : > { %v1337_v11 = vadd.f32 %v1321_v17, %v1302_v13  ;;  %v975_v42 = vadd.f32 %v959_v26, %v940_v1  ;;  %v563_v17 = vmul.f32 %v3771_v63, %v3776_v35  ;;  %v796_v62 = vmul.f32 %v2272_v33, %v3810_v27  ;;  %v2790_v1 = vld [vmem:[#allocation2 + $0xa9] sm:$0xff] }
 0x104   : > { %v742_v38 = vadd.f32 %v726_v58, %v707_v21  ;;  %v1088_v26 = vmul.f32 %v2323_v3, %v3811_v55  ;;  %3812 = vst [vmem:[#allocation35_spill] sm:$0xff] %v2790_v1  ;;  %v544_v50 = vadd.f32 %v528_v37, %v509_v24  ;;  %v598_v4 = vmul.f32 %v2246_v10, %v3813_v16  ;;  %v2796_v58 = vld [vmem:[#allocation2 + $0xb0] sm:$0xff] }
 0x105   : > { %v1372_v13 = vadd.f32 %v1356_v8, %v1337_v11  ;;  %v1010_v29 = vadd.f32 %v994_v56, %v975_v42  ;;  %v831_v11 = vmul.f32 %v2274_v34, %v2790_v1  ;;  %3814 = vst [vmem:[#allocation39_spill] sm:$0xff] %v2796_v58  ;;  %v1123_v42 = vmul.f32 %v2325_v6, %v3815_v12  ;;  %v3816_v35 = vld [vmem:[#allocation28_spill] sm:$0xff] }
 0x106   : > { %v777_v8 = vadd.f32 %v761_v59, %v742_v38  ;;  %v579_v56 = vadd.f32 %v563_v17, %v544_v50  ;;  %v633_v55 = vmul.f32 %v2251_v15, %v2796_v58  ;;  %v3818_v38 = vld [vmem:[#allocation59_spill] sm:$0xff]  ;;  %v3820_v17 = vld [vmem:[#allocation29_spill] sm:$0xff] }
 0x107   : > { %v1407_v5 = vadd.f32 %v1391_v36, %v1372_v13  ;;  %v1045_v21 = vadd.f32 %v1029_v40, %v1010_v29  ;;  %v890_v36 = vmul.f32 %v2290_v47, %v3816_v35  ;;  %v2804_v13 = vld [vmem:[#allocation2 + $0x9b] sm:$0xff]  ;;  %v1158_v16 = vmul.f32 %v2336_v19, %v3818_v38 }
 0x108   : > { %v812_v24 = vadd.f32 %v796_v62, %v777_v8  ;;  %3817 = vst [vmem:[#allocation37_spill] sm:$0xff] %v2804_v13  ;;  %v614_v1 = vadd.f32 %v598_v4, %v579_v56  ;;  %v692_v29 = vmul.f32 %v2258_v20, %v3786_v43  ;;  %v3819_v50 = vld [vmem:[#allocation43_spill] sm:$0xff]  ;;  %v925_v35 = vmul.f32 %v2292_v48, %v3820_v17 }
 0x109   : > { %v1442_v37 = vadd.f32 %v1426_v0, %v1407_v5  ;;  %v1104_v59 = vadd.f32 %v1088_v26, %v1045_v21  ;;  %v1193_v40 = vmul.f32 %v2338_v22, %v3819_v50  ;;  %v1228_v5 = vmul.f32 %v2358_v32, %v2804_v13 }
 0x10a   : > { %v847_v62 = vadd.f32 %v831_v11, %v812_v24  ;;  %v1287_v26 = vmul.f32 %v2369_v44, %v3784_v54  ;;  %v649_v8 = vadd.f32 %v633_v55, %v614_v1  ;;  %v727_v4 = vmul.f32 %v2264_v25, %v3789_v51  ;;  %v3822_v55 = vld [vmem:[#allocation56_spill] sm:$0xff] }
 0x10b   : > { %1458 = vst [vmem:[%s2154_s25 + $0x20] sm:$0xff] %v1442_v37  ;;  %v1139_v0 = vadd.f32 %v1123_v42, %v1104_v59  ;;  %v1322_v43 = vmul.f32 %v3733_v18, %v3788_v46  ;;  %v1357_v21 = vmul.f32 %v2381_v49, %v2613_v39  ;;  %v3821_v37 = vld [vmem:[#allocation60_spill] sm:$0xff]  ;;  %v762_v42 = vmul.f32 %v2270_v31, %v3792_v41 }
 0x10c   : > { %v906_v56 = vadd.f32 %v890_v36, %v847_v62  ;;  %v960_v11 = vmul.f32 %v2298_v52, %v3821_v37  ;;  %v708_v13 = vadd.f32 %v692_v29, %v649_v8  ;;  %v494_v54 = vmul.f32 %v3765_v28, %v3793_v61  ;;  %v3823_v39 = vld [vmem:[#allocation40_spill] sm:$0xff] }
 0x10d   : > { %v1174_v24 = vadd.f32 %v1158_v16, %v1139_v0  ;;  %v995_v59 = vmul.f32 %v2300_v53, %v3822_v55  ;;  %v797_v46 = vmul.f32 %v2272_v33, %v2729_v9  ;;  %v529_v36 = vmul.f32 %v3768_v23, %v3823_v39  ;;  %v2837_v51 = vld [vmem:[#allocation2 + $0xaa] sm:$0xff]  ;;  %v2850_v39 = vld [vmem:[#allocation2 + $0x9c] sm:$0xff] }
 0x10e   : > { %v941_v1 = vadd.f32 %v925_v35, %v906_v56  ;;  %3824 = vst [vmem:[#allocation44_spill] sm:$0xff] %v2837_v51  ;;  %v2839_v16 = vld [vmem:[#allocation2 + $0xb1] sm:$0xff]  ;;  %v743_v29 = vadd.f32 %v727_v4, %v708_v13  ;;  %v510_v0 = vadd.f32 %v3769_v57, %v494_v54  ;;  %v564_v61 = vmul.f32 %v3771_v63, %v2594_v30  ;;  %v3826_v35 = vld [vmem:[#allocation27_spill] sm:$0xff] }
 0x10f   : > { %v1209_v62 = vadd.f32 %v1193_v40, %v1174_v24  ;;  %3825 = vst [vmem:[#allocation50_spill] sm:$0xff] %v2839_v16  ;;  %v1392_v8 = vmul.f32 %v2383_v14, %v3826_v35  ;;  %v1030_v9 = vmul.f32 %v2310_v60, %v2837_v51  ;;  %v832_v40 = vmul.f32 %v2274_v34, %v2839_v16  ;;  %v3828_v35 = vld [vmem:[#allocation32_spill] sm:$0xff]  ;;  %v2860_v51 = vld [vmem:[#allocation2 + $0xc0] sm:$0xff] }
 0x110   : > { %v976_v56 = vadd.f32 %v960_v11, %v941_v1  ;;  %3827 = vst [vmem:[#allocation41_spill] sm:$0xff] %v2850_v39  ;;  %v778_v41 = vadd.f32 %v762_v42, %v743_v29  ;;  %v545_v13 = vadd.f32 %v529_v36, %v510_v0  ;;  %v599_v4 = vmul.f32 %v2246_v10, %v2746_v45  ;;  %v3830_v29 = vld [vmem:[#allocation33_spill] sm:$0xff] }
 0x111   : > { %v1244_v24 = vadd.f32 %v1228_v5, %v1209_v62  ;;  %v1427_v54 = vmul.f32 %v2401_v2, %v2850_v39  ;;  %v1089_v11 = vmul.f32 %v2323_v3, %v3828_v35  ;;  %v891_v1 = vmul.f32 %v2290_v47, %v2481_v7  ;;  %3829 = vst [vmem:[#allocation31_spill] sm:$0xff] %v2860_v51  ;;  %v3831_v39 = vld [vmem:[#allocation45_spill] sm:$0xff] }
 0x112   : > { %v1011_v30 = vadd.f32 %v995_v59, %v976_v56  ;;  %v813_v62 = vadd.f32 %v797_v46, %v778_v41  ;;  %v580_v16 = vadd.f32 %v564_v61, %v545_v13  ;;  %v634_v42 = vmul.f32 %v2251_v15, %v2860_v51  ;;  %v3832_v56 = vld [vmem:[#allocation54_spill] sm:$0xff]  ;;  %v2870_v7 = vld [vmem:[#allocation2 + $0xab] sm:$0xff] }
 0x113   : > { %v1303_v5 = vadd.f32 %v1287_v26, %v1244_v24  ;;  %v1124_v0 = vmul.f32 %v2325_v6, %v3830_v29  ;;  %v1159_v59 = vmul.f32 %v2336_v19, %v3831_v39  ;;  %v926_v35 = vmul.f32 %v2292_v48, %v3832_v56  ;;  %3833 = vst [vmem:[#allocation51_spill] sm:$0xff] %v2870_v7  ;;  %v3834_v46 = vld [vmem:[#allocation26_spill] sm:$0xff]  ;;  %v3835_v24 = vld [vmem:[#allocation19_spill] sm:$0xff]  ;;  %v3836_v13 = vld [vmem:[#allocation36_spill] sm:$0xff] }
 0x114   : > { %v1046_v36 = vadd.f32 %v1030_v9, %v1011_v30  ;;  %v848_v55 = vadd.f32 %v832_v40, %v813_v62  ;;  %v615_v26 = vadd.f32 %v599_v4, %v580_v16  ;;  %v693_v41 = vmul.f32 %v2258_v20, %v3834_v46  ;;  %v3838_v4 = vld [vmem:[#allocation46_spill] sm:$0xff]  ;;  %v2888_v29 = vld [vmem:[#allocation2 + $0xb2] sm:$0xff] }
 0x115   : > { %v1338_v45 = vadd.f32 %v1322_v43, %v1303_v5  ;;  %v1194_v30 = vmul.f32 %v2338_v22, %v3835_v24  ;;  %v1229_v9 = vmul.f32 %v2358_v32, %v2870_v7  ;;  %v961_v39 = vmul.f32 %v2298_v52, %v3836_v13  ;;  %v3837_v5 = vld [vmem:[#allocation53_spill] sm:$0xff]  ;;  %v3840_v46 = vld [vmem:[#allocation18_spill] sm:$0xff]  ;;  %3841 = vst [vmem:[#allocation22_spill] sm:$0xff] %v2888_v29 }
 0x116   : > { %v1105_v61 = vadd.f32 %v1089_v11, %v1046_v36  ;;  %v907_v56 = vadd.f32 %v891_v1, %v848_v55  ;;  %v650_v43 = vadd.f32 %v634_v42, %v615_v26  ;;  %v728_v40 = vmul.f32 %v2264_v25, %v3837_v5  ;;  %v3839_v11 = vld [vmem:[#allocation47_spill] sm:$0xff]  ;;  %v3842_v1 = vld [vmem:[#allocation38_spill] sm:$0xff] }
 0x117   : > { %v1373_v51 = vadd.f32 %v1357_v21, %v1338_v45  ;;  %v1288_v62 = vmul.f32 %v2369_v44, %v3838_v4  ;;  %v1323_v36 = vmul.f32 %v3733_v18, %v3839_v11  ;;  %v996_v24 = vmul.f32 %v2300_v53, %v3840_v46  ;;  %v3844_v4 = vld [vmem:[#allocation35_spill] sm:$0xff] }
 0x118   : > { %v1140_v16 = vadd.f32 %v1124_v0, %v1105_v61  ;;  %v942_v13 = vadd.f32 %v926_v35, %v907_v56  ;;  %v709_v45 = vadd.f32 %v693_v41, %v650_v43  ;;  %v763_v21 = vmul.f32 %v2270_v31, %v3810_v27  ;;  %v3843_v0 = vld [vmem:[#allocation55_spill] sm:$0xff]  ;;  %v3845_v41 = vld [vmem:[#allocation42_spill] sm:$0xff] }
 0x119   : > { %v1408_v7 = vadd.f32 %v1392_v8, %v1373_v51  ;;  %v1031_v55 = vmul.f32 %v2310_v60, %v2888_v29  ;;  %v495_v42 = vmul.f32 %v3765_v28, %v3842_v1  ;;  %v530_v26 = vmul.f32 %v3768_v23, %v3843_v0 }
 0x11a   : > { %v1175_v25 = vadd.f32 %v1159_v59, %v1140_v16  ;;  %v977_v51 = vadd.f32 %v961_v39, %v942_v13  ;;  %v744_v8 = vadd.f32 %v728_v40, %v709_v45  ;;  %v798_v56 = vmul.f32 %v2272_v33, %v3844_v4  ;;  %v2902_v59 = vld [vmem:[#allocation2 + $0xc1] sm:$0xff]  ;;  %v3847_v16 = vld [vmem:[#allocation49_spill] sm:$0xff] }
 0x11b   : > { %v1443_v61 = vadd.f32 %v1427_v54, %v1408_v7  ;;  %v1358_v31 = vmul.f32 %v2381_v49, %v3845_v41  ;;  %3846 = vst [vmem:[#allocation23_spill] sm:$0xff] %v2902_v59  ;;  %v511_v43 = vadd.f32 %v3769_v57, %v495_v42  ;;  %v565_v28 = vmul.f32 %v3771_v63, %v3847_v16  ;;  %v3848_v7 = vld [vmem:[#allocation21_spill] sm:$0xff] }
 0x11c   : > { %v1210_v35 = vadd.f32 %v1194_v30, %v1175_v25  ;;  %v1012_v1 = vadd.f32 %v996_v24, %v977_v51  ;;  %v1090_v23 = vmul.f32 %v2323_v3, %v3815_v12  ;;  %v779_v39 = vadd.f32 %v763_v21, %v744_v8  ;;  %v2916_v40 = vld [vmem:[#allocation2 + $0xac] sm:$0xff] }
 0x11d   : > { %1459 = vst [vmem:[%s2154_s25 + $0x28] sm:$0xff] %v1443_v61  ;;  %v833_v33 = vmul.f32 %v2274_v34, %v2902_v59  ;;  %v1393_v30 = vmul.f32 %v2383_v14, %v3848_v7  ;;  %v546_v13 = vadd.f32 %v530_v26, %v511_v43  ;;  %v600_v57 = vmul.f32 %v2246_v10, %v2796_v58  ;;  %v2922_v21 = vld [vmem:[#allocation2 + $0xc8] sm:$0xff] }
 0x11e   : > { %v1245_v54 = vadd.f32 %v1229_v9, %v1210_v35  ;;  %3849 = vst [vmem:[#allocation25_spill] sm:$0xff] %v2916_v40  ;;  %v1047_v63 = vadd.f32 %v1031_v55, %v1012_v1  ;;  %v1125_v24 = vmul.f32 %v2325_v6, %v3818_v38  ;;  %v814_v45 = vadd.f32 %v798_v56, %v779_v39  ;;  %v3853_v56 = vld [vmem:[#allocation52_spill] sm:$0xff] }
 0x11f   : > { %v892_v12 = vmul.f32 %v2290_v47, %v3820_v17  ;;  %3850 = vst [vmem:[#allocation34_spill] sm:$0xff] %v2922_v21  ;;  %v1428_v9 = vmul.f32 %v2401_v2, %v2916_v40  ;;  %v581_v25 = vadd.f32 %v565_v28, %v546_v13  ;;  %v635_v10 = vmul.f32 %v2251_v15, %v2922_v21  ;;  %v2932_v47 = vld [vmem:[#allocation2 + $0xb3] sm:$0xff]  ;;  %v3854_v1 = vld [vmem:[#allocation56_spill] sm:$0xff]  ;;  %v2946_v13 = vld [vmem:[#allocation6 + $0x6] ss:$0 sm:$0xff] }
 0x120   : > { %v1304_v34 = vadd.f32 %v1288_v62, %v1245_v54  ;;  %v1106_v42 = vadd.f32 %v1090_v23, %v1047_v63  ;;  %v1160_v55 = vmul.f32 %v2336_v19, %v3819_v50  ;;  %v849_v26 = vadd.f32 %v833_v33, %v814_v45  ;;  %3851 = vst [vmem:[#allocation24_spill] sm:$0xff] %v2932_v47  ;;  %v3852_v17 = vld [vmem:[#allocation37_spill] sm:$0xff]  ;;  %v2944_v33 = vld [vmem:[#allocation2 + $0xc2] sm:$0xff]  ;;  %v3858_v45 = vld [vmem:[#allocation44_spill] sm:$0xff] }
 0x121   : > { %v927_v61 = vmul.f32 %v2292_v48, %v3821_v37  ;;  %v1195_v62 = vmul.f32 %v2338_v22, %v3852_v17  ;;  %v616_v8 = vadd.f32 %v600_v57, %v581_v25  ;;  %v694_v35 = vmul.f32 %v2258_v20, %v3853_v56  ;;  %v3855_v48 = vld [vmem:[#allocation62_spill] sm:$0xff]  ;;  %3856 = vst [vmem:[#allocation57_spill] sm:$0xff] %v2944_v33  ;;  %v3857_v57 = vld [vmem:[#allocation61_spill] sm:$0xff]  ;;  %v2954_v25 = vld [vmem:[#allocation6 + $0xb] ss:$0 sm:$0xff] }
 0x122   : > { %v1339_v51 = vadd.f32 %v1323_v36, %v1304_v34  ;;  %v1141_v43 = vadd.f32 %v1125_v24, %v1106_v42  ;;  %v1230_v15 = vmul.f32 %v2358_v32, %v2932_v47  ;;  %v908_v28 = vadd.f32 %v892_v12, %v849_v26  ;;  %v3859_v42 = vld [vmem:[#allocation30_spill] sm:$0xff]  ;;  %v2962_v56 = vld [vmem:[#allocation6 + $0x10] ss:$0 sm:$0xff] }
 0x123   : > { %v962_v23 = vmul.f32 %v2298_v52, %v3854_v1  ;;  %v1289_v36 = vmul.f32 %v2369_v44, %v3855_v48  ;;  %v651_v54 = vadd.f32 %v635_v10, %v616_v8  ;;  %v729_v20 = vmul.f32 %v2946_v13, %v3857_v57  ;;  %v2958_v26 = vld [vmem:[#allocation6] ss:$0 sm:$0xff] }
 0x124   : > { %v1374_v39 = vadd.f32 %v1358_v31, %v1339_v51  ;;  %v1176_v63 = vadd.f32 %v1160_v55, %v1141_v43  ;;  %v943_v24 = vadd.f32 %v927_v61, %v908_v28  ;;  %v997_v12 = vmul.f32 %v2300_v53, %v3858_v45  ;;  %v3860_v51 = vld [vmem:[#allocation40_spill] sm:$0xff]  ;;  %v3861_v53 = vld [vmem:[#allocation50_spill] sm:$0xff] }
 0x125   : > { %v1032_v52 = vmul.f32 %v2310_v60, %v2944_v33  ;;  %v710_v34 = vadd.f32 %v694_v35, %v651_v54  ;;  %v764_v10 = vmul.f32 %v2954_v25, %v3859_v42  ;;  %v496_v8 = vmul.f32 %v2958_v26, %v3860_v51  ;;  %v3862_v35 = vld [vmem:[#allocation63_spill] sm:$0xff]  ;;  %v2973_v48 = vld [vmem:[%s3484_s2] ss:$0 sm:$0xff]  ;;  %v3863_v54 = vld [vmem:[#allocation20_spill] sm:$0xff] }
 0x126   : > { %v1409_v31 = vadd.f32 %v1393_v30, %v1374_v39  ;;  %v1211_v55 = vadd.f32 %v1195_v62, %v1176_v63  ;;  %v978_v61 = vadd.f32 %v962_v23, %v943_v24  ;;  %v799_v60 = vmul.f32 %v2962_v56, %v3861_v53  ;;  %v2966_v30 = vld [vmem:[#allocation6 + $0x5] ss:$0 sm:$0xff]  ;;  %v2976_v23 = vld [vmem:[#allocation6 + $0xa] ss:$0 sm:$0xff]  ;;  %v2991_v45 = vld [vmem:[#allocation6 + $0xf] ss:$0 sm:$0xff] }
 0x127   : > { %v531_v43 = vmul.f32 %v2966_v30, %v3862_v35  ;;  %v745_v39 = vadd.f32 %v729_v20, %v710_v34  ;;  %v512_v62 = vadd.f32 %v2973_v48, %v496_v8  ;;  %v566_v63 = vmul.f32 %v2976_v23, %v3863_v54  ;;  %v3864_v51 = vld [vmem:[#allocation48_spill] sm:$0xff]  ;;  %v3865_v35 = vld [vmem:[#allocation33_spill] sm:$0xff]  ;;  %v3001_v54 = vld [vmem:[#allocation6 + $0x2] ss:$0 sm:$0xff] }
 0x128   : > { %v1444_v28 = vadd.f32 %v1428_v9, %v1409_v31  ;;  %v1246_v24 = vadd.f32 %v1230_v15, %v1211_v55  ;;  %v1324_v53 = vmul.f32 %v3733_v18, %v3864_v51  ;;  %v1013_v33 = vadd.f32 %v997_v12, %v978_v61  ;;  %v2984_v20 = vld [vmem:[#allocation2 + $0xc9] sm:$0xff]  ;;  %v2987_v34 = vld [vmem:[#allocation6 + $0x15] ss:$0 sm:$0xff]  ;;  %v3005_v51 = vld [vmem:[#allocation6 + $0x14] ss:$0 sm:$0xff] }
 0x129   : > { %v1091_v9 = vmul.f32 %v2323_v3, %v3865_v35  ;;  %3866 = vst [vmem:[#allocation58_spill] sm:$0xff] %v2984_v20  ;;  %v780_v31 = vadd.f32 %v764_v10, %v745_v39  ;;  %v834_v8 = vmul.f32 %v2987_v34, %v2984_v20  ;;  %v547_v42 = vadd.f32 %v531_v43, %v512_v62  ;;  %v3867_v15 = vld [vmem:[#allocation31_spill] sm:$0xff]  ;;  %v3869_v35 = vld [vmem:[#allocation45_spill] sm:$0xff]  ;;  %v3871_v20 = vld [vmem:[#allocation54_spill] sm:$0xff] }
 0x12a   : > { %1460 = vst [vmem:[%s2154_s25 + $0x30] sm:$0xff] %v1444_v28  ;;  %v601_v55 = vmul.f32 %v2991_v45, %v3867_v15  ;;  %v1305_v18 = vadd.f32 %v1289_v36, %v1246_v24  ;;  %v3868_v12 = vld [vmem:[#allocation27_spill] sm:$0xff]  ;;  %v1048_v3 = vadd.f32 %v1032_v52, %v1013_v33  ;;  %v1126_v28 = vmul.f32 %v2325_v6, %v3869_v35  ;;  %v2999_v10 = vld [vmem:[#allocation2 + $0xd8] sm:$0xff] }
 0x12b   : > { %v1359_v61 = vmul.f32 %v2381_v49, %v3868_v12  ;;  %3870 = vst [vmem:[#allocation28_spill] sm:$0xff] %v2999_v10  ;;  %v815_v39 = vadd.f32 %v799_v60, %v780_v31  ;;  %v893_v43 = vmul.f32 %v3001_v54, %v3871_v20  ;;  %v582_v62 = vadd.f32 %v566_v63, %v547_v42  ;;  %v3872_v49 = vld [vmem:[#allocation41_spill] sm:$0xff]  ;;  %v3873_v6 = vld [vmem:[#allocation19_spill] sm:$0xff]  ;;  %v3875_v20 = vld [vmem:[#allocation36_spill] sm:$0xff] }
 0x12c   : > { %v636_v36 = vmul.f32 %v3005_v51, %v2999_v10  ;;  %v1340_v24 = vadd.f32 %v1324_v53, %v1305_v18  ;;  %v1394_v33 = vmul.f32 %v2383_v14, %v3872_v49  ;;  %v1107_v52 = vadd.f32 %v1091_v9, %v1048_v3  ;;  %v3013_v60 = vld [vmem:[#allocation2 + $0xb4] sm:$0xff]  ;;  %v3015_v35 = vld [vmem:[#allocation6 + $0x7] ss:$0 sm:$0xff]  ;;  %v3019_v12 = vld [vmem:[#allocation6 + $0x1] ss:$0 sm:$0xff] }
 0x12d   : > { %v1161_v15 = vmul.f32 %v2336_v19, %v3873_v6  ;;  %3874 = vst [vmem:[#allocation59_spill] sm:$0xff] %v3013_v60  ;;  %v850_v31 = vadd.f32 %v834_v8, %v815_v39  ;;  %v928_v42 = vmul.f32 %v3015_v35, %v3875_v20  ;;  %v617_v63 = vadd.f32 %v601_v55, %v582_v62  ;;  %v3876_v19 = vld [vmem:[#allocation51_spill] sm:$0xff]  ;;  %v3029_v10 = vld [vmem:[#allocation6 + $0xc] ss:$0 sm:$0xff] }
 0x12e   : > { %v695_v53 = vmul.f32 %v3019_v12, %v3837_v5  ;;  %v1375_v18 = vadd.f32 %v1359_v61, %v1340_v24  ;;  %v1429_v14 = vmul.f32 %v2401_v2, %v3013_v60  ;;  %v1142_v9 = vadd.f32 %v1126_v28, %v1107_v52  ;;  %v3027_v8 = vld [vmem:[#allocation2 + $0xc3] sm:$0xff]  ;;  %v3041_v52 = vld [vmem:[#allocation6 + $0x11] ss:$0 sm:$0xff] }
 0x12f   : > { %v1196_v3 = vmul.f32 %v2338_v22, %v3876_v19  ;;  %v909_v39 = vadd.f32 %v893_v43, %v850_v31  ;;  %v963_v55 = vmul.f32 %v3029_v10, %v3840_v46  ;;  %v652_v62 = vadd.f32 %v636_v36, %v617_v63  ;;  %v3039_v28 = vld [vmem:[#allocation2 + $0xca] sm:$0xff] }
 0x130   : > { %v730_v5 = vmul.f32 %v2946_v13, %v3810_v27  ;;  %v1410_v61 = vadd.f32 %v1394_v33, %v1375_v18  ;;  %v1177_v24 = vadd.f32 %v1161_v15, %v1142_v9  ;;  %v1231_v2 = vmul.f32 %v2358_v32, %v3027_v8  ;;  %3877 = vst [vmem:[#allocation29_spill] sm:$0xff] %v3039_v28  ;;  %v3047_v18 = vld [vmem:[#allocation6 + $0x16] ss:$0 sm:$0xff] }
 0x131   : > { %v1290_v22 = vmul.f32 %v2369_v44, %v3839_v11  ;;  %v944_v43 = vadd.f32 %v928_v42, %v909_v39  ;;  %v998_v36 = vmul.f32 %v3041_v52, %v2888_v29  ;;  %v711_v31 = vadd.f32 %v695_v53, %v652_v62  ;;  %v3062_v62 = vld [vmem:[#allocation2 + $0xd9] sm:$0xff] }
 0x132   : > { %v765_v33 = vmul.f32 %v2954_v25, %v3844_v4  ;;  %v1445_v15 = vadd.f32 %v1429_v14, %v1410_v61  ;;  %v1212_v63 = vadd.f32 %v1196_v3, %v1177_v24  ;;  %v1033_v32 = vmul.f32 %v3047_v18, %v3039_v28  ;;  %v3058_v14 = vld [vmem:[#allocation6 + $0x9] ss:$0 sm:$0xff]  ;;  %3878 = vst [vmem:[#allocation60_spill] sm:$0xff] %v3062_v62 }
 0x133   : > { %v497_v44 = vmul.f32 %v2958_v26, %v3843_v0  ;;  %v979_v11 = vadd.f32 %v963_v55, %v944_v43  ;;  %v746_v42 = vadd.f32 %v730_v5, %v711_v31  ;;  %v800_v9 = vmul.f32 %v2962_v56, %v2902_v59  ;;  %v3067_v5 = vld [vmem:[#allocation6 + $0x3] ss:$0 sm:$0xff] }
 0x134   : > { %v532_v53 = vmul.f32 %v2966_v30, %v3847_v16  ;;  %1461 = vst [vmem:[%s2154_s25 + $0x38] sm:$0xff] %v1445_v15  ;;  %v1247_v39 = vadd.f32 %v1231_v2, %v1212_v63  ;;  %v1325_v3 = vmul.f32 %v3058_v14, %v3845_v41  ;;  %v567_v0 = vmul.f32 %v2976_v23, %v2796_v58  ;;  %v3073_v15 = vld [vmem:[#allocation6 + $0xe] ss:$0 sm:$0xff]  ;;  %v3888_v59 = vld [vmem:[#allocation63_spill] sm:$0xff] }
 0x135   : > { %v513_v61 = vadd.f32 %v2973_v48, %v497_v44  ;;  %v1014_v55 = vadd.f32 %v998_v36, %v979_v11  ;;  %v1092_v24 = vmul.f32 %v3067_v5, %v3818_v38  ;;  %v781_v43 = vadd.f32 %v765_v33, %v746_v42  ;;  %v3079_v11 = vld [vmem:[#allocation6 + $0x8] ss:$0 sm:$0xff] }
 0x136   : > { %v835_v2 = vmul.f32 %v2987_v34, %v3062_v62  ;;  %v1306_v31 = vadd.f32 %v1290_v22, %v1247_v39  ;;  %v1360_v63 = vmul.f32 %v3073_v15, %v3848_v7  ;;  %v602_v58 = vmul.f32 %v2991_v45, %v2922_v21  ;;  %v3085_v22 = vld [vmem:[#allocation2 + $0xe0] sm:$0xff]  ;;  %v3087_v62 = vld [vmem:[#allocation6 + $0x13] ss:$0 sm:$0xff]  ;;  %v3884_v21 = vld [vmem:[#allocation48_spill] sm:$0xff] }
 0x137   : > { %v548_v44 = vadd.f32 %v532_v53, %v513_v61  ;;  %v1049_v36 = vadd.f32 %v1033_v32, %v1014_v55  ;;  %v1127_v38 = vmul.f32 %v3079_v11, %v3819_v50  ;;  %v816_v33 = vadd.f32 %v800_v9, %v781_v43  ;;  %3879 = vst [vmem:[#allocation32_spill] sm:$0xff] %v3085_v22  ;;  %v3093_v55 = vld [vmem:[#allocation2 + $0xc4] sm:$0xff]  ;;  %v3095_v50 = vld [vmem:[#allocation6 + $0xd] ss:$0 sm:$0xff] }
 0x138   : > { %v894_v42 = vmul.f32 %v3001_v54, %v3821_v37  ;;  %v1341_v39 = vadd.f32 %v1325_v3, %v1306_v31  ;;  %v1395_v53 = vmul.f32 %v3087_v62, %v2916_v40  ;;  %v637_v32 = vmul.f32 %v3005_v51, %v3085_v22  ;;  %3880 = vst [vmem:[#allocation26_spill] sm:$0xff] %v3093_v55  ;;  %v3101_v31 = vld [vmem:[#allocation6 + $0x18] ss:$0 sm:$0xff]  ;;  %v3109_v22 = vld [vmem:[#allocation6 + $0x12] ss:$0 sm:$0xff] }
 0x139   : > { %v583_v61 = vadd.f32 %v567_v0, %v548_v44  ;;  %v1108_v7 = vadd.f32 %v1092_v24, %v1049_v36  ;;  %v1162_v37 = vmul.f32 %v3095_v50, %v3852_v17  ;;  %v851_v9 = vadd.f32 %v835_v2, %v816_v33  ;;  %v3107_v24 = vld [vmem:[#allocation2 + $0xcb] sm:$0xff]  ;;  %v3115_v17 = vld [vmem:[#allocation6 + $0x17] ss:$0 sm:$0xff] }
 0x13a   : > { %v929_v3 = vmul.f32 %v3015_v35, %v3854_v1  ;;  %v1376_v43 = vadd.f32 %v1360_v63, %v1341_v39  ;;  %v1430_v0 = vmul.f32 %v3101_v31, %v3093_v55  ;;  %v696_v40 = vmul.f32 %v3019_v12, %v3857_v57  ;;  %3881 = vst [vmem:[#allocation53_spill] sm:$0xff] %v3107_v24  ;;  %v3882_v1 = vld [vmem:[#allocation44_spill] sm:$0xff]  ;;  %v3883_v57 = vld [vmem:[#allocation30_spill] sm:$0xff]  ;;  %v3121_v55 = vld [vmem:[#allocation6 + $0x4] ss:$0 sm:$0xff] }
 0x13b   : > { %v618_v44 = vadd.f32 %v602_v58, %v583_v61  ;;  %v1143_v36 = vadd.f32 %v1127_v38, %v1108_v7  ;;  %v1197_v2 = vmul.f32 %v3109_v22, %v2932_v47  ;;  %v910_v33 = vadd.f32 %v894_v42, %v851_v9  ;;  %v3125_v9 = vld [vmem:[#allocation2 + $0xda] sm:$0xff] }
 0x13c   : > { %v964_v63 = vmul.f32 %v3029_v10, %v3882_v1  ;;  %v1411_v39 = vadd.f32 %v1395_v53, %v1376_v43  ;;  %v1232_v58 = vmul.f32 %v3115_v17, %v3107_v24  ;;  %v731_v7 = vmul.f32 %v2946_v13, %v3883_v57  ;;  %3885 = vst [vmem:[#allocation46_spill] sm:$0xff] %v3125_v9  ;;  %v3886_v53 = vld [vmem:[#allocation57_spill] sm:$0xff]  ;;  %v3887_v24 = vld [vmem:[#allocation50_spill] sm:$0xff] }
 0x13d   : > { %v653_v61 = vadd.f32 %v637_v32, %v618_v44  ;;  %v1178_v38 = vadd.f32 %v1162_v37, %v1143_v36  ;;  %v1291_v42 = vmul.f32 %v3121_v55, %v3884_v21  ;;  %v945_v1 = vadd.f32 %v929_v3, %v910_v33  ;;  %v3889_v21 = vld [vmem:[#allocation20_spill] sm:$0xff]  ;;  %v3890_v3 = vld [vmem:[#allocation27_spill] sm:$0xff] }
 0x13e   : > { %v999_v43 = vmul.f32 %v3041_v52, %v3886_v53  ;;  %v1446_v47 = vadd.f32 %v1430_v0, %v1411_v39  ;;  %v1034_v32 = vmul.f32 %v3047_v18, %v3125_v9  ;;  %v766_v57 = vmul.f32 %v2954_v25, %v3887_v24  ;;  %v3891_v0 = vld [vmem:[#allocation45_spill] sm:$0xff] }
 0x13f   : > { %v712_v44 = vadd.f32 %v696_v40, %v653_v61  ;;  %v1213_v37 = vadd.f32 %v1197_v2, %v1178_v38  ;;  %v980_v36 = vadd.f32 %v964_v63, %v945_v1  ;;  %v498_v16 = vmul.f32 %v2958_v26, %v3888_v59  ;;  %v3892_v40 = vld [vmem:[#allocation58_spill] sm:$0xff]  ;;  %v3894_v63 = vld [vmem:[#allocation31_spill] sm:$0xff] }
 0x140   : > { %v533_v28 = vmul.f32 %v2966_v30, %v3889_v21  ;;  %1462 = vst [vmem:[%s2154_s25 + $0x40] sm:$0xff] %v1446_v47  ;;  %v1326_v33 = vmul.f32 %v3058_v14, %v3890_v3  ;;  %v1093_v39 = vmul.f32 %v3067_v5, %v3891_v0  ;;  %v801_v61 = vmul.f32 %v2962_v56, %v3892_v40  ;;  %v3144_v1 = vld [vmem:[#allocation2 + $0xe1] sm:$0xff] }
 0x141   : > { %v747_v9 = vadd.f32 %v731_v7, %v712_v44  ;;  %v1248_v53 = vadd.f32 %v1232_v58, %v1213_v37  ;;  %v1015_v2 = vadd.f32 %v999_v43, %v980_v36  ;;  %3893 = vst [vmem:[#allocation47_spill] sm:$0xff] %v3144_v1  ;;  %v514_v59 = vadd.f32 %v2973_v48, %v498_v16  ;;  %v3895_v37 = vld [vmem:[#allocation28_spill] sm:$0xff] }
 0x142   : > { %v568_v38 = vmul.f32 %v2976_v23, %v3894_v63  ;;  %v1361_v47 = vmul.f32 %v3073_v15, %v3872_v49  ;;  %v1128_v21 = vmul.f32 %v3079_v11, %v3873_v6  ;;  %v836_v7 = vmul.f32 %v2987_v34, %v3144_v1 }
 0x143   : > { %v782_v0 = vadd.f32 %v766_v57, %v747_v9  ;;  %v1307_v44 = vadd.f32 %v1291_v42, %v1248_v53  ;;  %v1050_v58 = vadd.f32 %v1034_v32, %v1015_v2  ;;  %v549_v43 = vadd.f32 %v533_v28, %v514_v59  ;;  %v3163_v57 = vld [vmem:[#allocation2 + $0xf0] sm:$0xff] }
 0x144   : > { %v603_v36 = vmul.f32 %v2991_v45, %v3895_v37  ;;  %v1396_v16 = vmul.f32 %v3087_v62, %v3013_v60  ;;  %v1163_v63 = vmul.f32 %v3095_v50, %v3876_v19  ;;  %v895_v6 = vmul.f32 %v3001_v54, %v3875_v20  ;;  %v3165_v9 = vld [vmem:[#allocation2 + $0xcc] sm:$0xff]  ;;  %v3175_v19 = vld [vmem:[#allocation2 + $0xdb] sm:$0xff] }
 0x145   : > { %v817_v49 = vadd.f32 %v801_v61, %v782_v0  ;;  %v1342_v42 = vadd.f32 %v1326_v33, %v1307_v44  ;;  %v1109_v53 = vadd.f32 %v1093_v39, %v1050_v58  ;;  %v584_v28 = vadd.f32 %v568_v38, %v549_v43  ;;  %3896 = vst [vmem:[#allocation18_spill] sm:$0xff] %v3175_v19 }
 0x146   : > { %v638_v32 = vmul.f32 %v3005_v51, %v3163_v57  ;;  %v1431_v2 = vmul.f32 %v3101_v31, %v3165_v9  ;;  %v1198_v59 = vmul.f32 %v3109_v22, %v3027_v8  ;;  %v930_v20 = vmul.f32 %v3015_v35, %v3840_v46 }
 0x147   : > { %v852_v61 = vadd.f32 %v836_v7, %v817_v49  ;;  %v1377_v0 = vadd.f32 %v1361_v47, %v1342_v42  ;;  %v1144_v60 = vadd.f32 %v1128_v21, %v1109_v53  ;;  %v619_v33 = vadd.f32 %v603_v36, %v584_v28  ;;  %v3185_v47 = vld [vmem:[#allocation2 + $0xe2] sm:$0xff]  ;;  %v3898_v42 = vld [vmem:[#allocation29_spill] sm:$0xff] }
 0x148   : > { %v697_v39 = vmul.f32 %v3019_v12, %v3810_v27  ;;  %v1233_v38 = vmul.f32 %v3115_v17, %v3175_v19  ;;  %v1292_v44 = vmul.f32 %v3121_v55, %v3845_v41  ;;  %v965_v49 = vmul.f32 %v3029_v10, %v2888_v29  ;;  %3897 = vst [vmem:[#allocation38_spill] sm:$0xff] %v3185_v47  ;;  %v3901_v19 = vld [vmem:[#allocation39_spill] sm:$0xff] }
 0x149   : > { %v911_v58 = vadd.f32 %v895_v6, %v852_v61  ;;  %v1412_v7 = vadd.f32 %v1396_v16, %v1377_v0  ;;  %v1179_v43 = vadd.f32 %v1163_v63, %v1144_v60  ;;  %v654_v21 = vadd.f32 %v638_v32, %v619_v33  ;;  %v3899_v6 = vld [vmem:[#allocation49_spill] sm:$0xff]  ;;  %v3900_v63 = vld [vmem:[#allocation23_spill] sm:$0xff] }
 0x14a   : > { %v732_v36 = vmul.f32 %v2946_v13, %v3844_v4  ;;  %v1000_v53 = vmul.f32 %v3041_v52, %v3898_v42  ;;  %v1035_v41 = vmul.f32 %v3047_v18, %v3185_v47  ;;  %v499_v28 = vmul.f32 %v2958_v26, %v3899_v6  ;;  %v3903_v42 = vld [vmem:[#allocation21_spill] sm:$0xff] }
 0x14b   : > { %v946_v27 = vadd.f32 %v930_v20, %v911_v58  ;;  %v1447_v61 = vadd.f32 %v1431_v2, %v1412_v7  ;;  %v1214_v16 = vadd.f32 %v1198_v59, %v1179_v43  ;;  %v713_v60 = vadd.f32 %v697_v39, %v654_v21  ;;  %v3902_v58 = vld [vmem:[#allocation34_spill] sm:$0xff]  ;;  %v3904_v59 = vld [vmem:[#allocation60_spill] sm:$0xff]  ;;  %v3905_v43 = vld [vmem:[#allocation43_spill] sm:$0xff] }
 0x14c   : > { %v767_v0 = vmul.f32 %v2954_v25, %v3900_v63  ;;  %v515_v33 = vadd.f32 %v2973_v48, %v499_v28  ;;  %v534_v20 = vmul.f32 %v2966_v30, %v3901_v19  ;;  %v569_v4 = vmul.f32 %v2976_v23, %v3902_v58  ;;  %v3209_v21 = vld [vmem:[#allocation2 + $0xf1] sm:$0xff] }
 0x14d   : > { %v981_v32 = vadd.f32 %v965_v49, %v946_v27  ;;  %1463 = vst [vmem:[%s2154_s25 + $0x48] sm:$0xff] %v1447_v61  ;;  %v1249_v47 = vadd.f32 %v1233_v38, %v1214_v16  ;;  %v1327_v6 = vmul.f32 %v3058_v14, %v3903_v42  ;;  %v748_v2 = vadd.f32 %v732_v36, %v713_v60  ;;  %v3907_v28 = vld [vmem:[#allocation32_spill] sm:$0xff]  ;;  %v3908_v61 = vld [vmem:[#allocation25_spill] sm:$0xff] }
 0x14e   : > { %v802_v39 = vmul.f32 %v2962_v56, %v3904_v59  ;;  %v1094_v49 = vmul.f32 %v3067_v5, %v3905_v43  ;;  %3906 = vst [vmem:[#allocation55_spill] sm:$0xff] %v3209_v21  ;;  %v550_v27 = vadd.f32 %v534_v20, %v515_v33  ;;  %v604_v19 = vmul.f32 %v2991_v45, %v3907_v28  ;;  %v3217_v60 = vld [vmem:[#allocation2 + $0xf8] sm:$0xff]  ;;  %v3914_v42 = vld [vmem:[#allocation24_spill] sm:$0xff] }
 0x14f   : > { %v1016_v7 = vadd.f32 %v1000_v53, %v981_v32  ;;  %v1308_v58 = vadd.f32 %v1292_v44, %v1249_v47  ;;  %v1362_v38 = vmul.f32 %v3073_v15, %v3908_v61  ;;  %v783_v16 = vadd.f32 %v767_v0, %v748_v2  ;;  %3909 = vst [vmem:[#allocation42_spill] sm:$0xff] %v3217_v60  ;;  %v3910_v32 = vld [vmem:[#allocation37_spill] sm:$0xff]  ;;  %v3911_v28 = vld [vmem:[#allocation26_spill] sm:$0xff]  ;;  %v3912_v61 = vld [vmem:[#allocation56_spill] sm:$0xff] }
 0x150   : > { %v837_v36 = vmul.f32 %v2987_v34, %v3209_v21  ;;  %v1129_v43 = vmul.f32 %v3079_v11, %v3910_v32  ;;  %v585_v59 = vadd.f32 %v569_v4, %v550_v27  ;;  %v639_v33 = vmul.f32 %v3005_v51, %v3217_v60  ;;  %v3227_v2 = vld [vmem:[#allocation2 + $0xdc] sm:$0xff]  ;;  %v3918_v60 = vld [vmem:[#allocation53_spill] sm:$0xff] }
 0x151   : > { %v1051_v53 = vadd.f32 %v1035_v41, %v1016_v7  ;;  %v1343_v20 = vadd.f32 %v1327_v6, %v1308_v58  ;;  %v1397_v44 = vmul.f32 %v3087_v62, %v3911_v28  ;;  %v818_v47 = vadd.f32 %v802_v39, %v783_v16  ;;  %3913 = vst [vmem:[#allocation52_spill] sm:$0xff] %v3227_v2  ;;  %v3915_v32 = vld [vmem:[#allocation30_spill] sm:$0xff]  ;;  %v3916_v28 = vld [vmem:[#allocation44_spill] sm:$0xff] }
 0x152   : > { %v896_v0 = vmul.f32 %v3001_v54, %v3912_v61  ;;  %v1164_v41 = vmul.f32 %v3095_v50, %v3914_v42  ;;  %v620_v7 = vadd.f32 %v604_v19, %v585_v59  ;;  %v698_v4 = vmul.f32 %v3019_v12, %v3915_v32  ;;  %v3237_v16 = vld [vmem:[#allocation2 + $0xe3] sm:$0xff] }
 0x153   : > { %v1110_v21 = vadd.f32 %v1094_v49, %v1051_v53  ;;  %v1378_v27 = vadd.f32 %v1362_v38, %v1343_v20  ;;  %v1432_v58 = vmul.f32 %v3101_v31, %v3227_v2  ;;  %v853_v6 = vadd.f32 %v837_v36, %v818_v47  ;;  %3917 = vst [vmem:[#allocation62_spill] sm:$0xff] %v3237_v16  ;;  %v3919_v20 = vld [vmem:[#allocation57_spill] sm:$0xff] }
 0x154   : > { %v931_v39 = vmul.f32 %v3015_v35, %v3916_v28  ;;  %v1199_v49 = vmul.f32 %v3109_v22, %v3918_v60  ;;  %v655_v53 = vadd.f32 %v639_v33, %v620_v7  ;;  %v733_v19 = vmul.f32 %v2946_v13, %v3887_v24  ;;  %v3920_v2 = vld [vmem:[#allocation41_spill] sm:$0xff]  ;;  %v3921_v24 = vld [vmem:[#allocation46_spill] sm:$0xff] }
 0x155   : > { %v1145_v61 = vadd.f32 %v1129_v43, %v1110_v21  ;;  %v1413_v59 = vadd.f32 %v1397_v44, %v1378_v27  ;;  %v1234_v38 = vmul.f32 %v3115_v17, %v3237_v16  ;;  %v912_v32 = vadd.f32 %v896_v0, %v853_v6  ;;  %v3255_v16 = vld [vmem:[#allocation2 + $0xf2] sm:$0xff] }
 0x156   : > { %v966_v36 = vmul.f32 %v3029_v10, %v3919_v20  ;;  %v1293_v21 = vmul.f32 %v3121_v55, %v3890_v3  ;;  %v714_v43 = vadd.f32 %v698_v4, %v655_v53  ;;  %v768_v33 = vmul.f32 %v2954_v25, %v3892_v40  ;;  %3922 = vst [vmem:[#allocation61_spill] sm:$0xff] %v3255_v16  ;;  %v3257_v20 = vld [vmem:[#allocation2 + $0xf9] sm:$0xff]  ;;  %v3924_v4 = vld [vmem:[#allocation20_spill] sm:$0xff] }
 0x157   : > { %v1180_v47 = vadd.f32 %v1164_v41, %v1145_v61  ;;  %v1448_v7 = vadd.f32 %v1432_v58, %v1413_v59  ;;  %v1328_v44 = vmul.f32 %v3058_v14, %v3920_v2  ;;  %v947_v27 = vadd.f32 %v931_v39, %v912_v32  ;;  %3923 = vst [vmem:[#allocation40_spill] sm:$0xff] %v3257_v20  ;;  %v3926_v2 = vld [vmem:[#allocation59_spill] sm:$0xff] }
 0x158   : > { %v1001_v0 = vmul.f32 %v3041_v52, %v3921_v24  ;;  %v749_v41 = vadd.f32 %v733_v19, %v714_v43  ;;  %v803_v3 = vmul.f32 %v2962_v56, %v3144_v1  ;;  %v500_v61 = vmul.f32 %v2958_v26, %v3924_v4 }
 0x159   : > { %v1215_v6 = vadd.f32 %v1199_v49, %v1180_v47  ;;  %1464 = vst [vmem:[%s2154_s25 + $0x50] sm:$0xff] %v1448_v7  ;;  %v982_v58 = vadd.f32 %v966_v36, %v947_v27  ;;  %v1036_v39 = vmul.f32 %v3047_v18, %v3255_v16  ;;  %v838_v53 = vmul.f32 %v2987_v34, %v3257_v20  ;;  %v3925_v49 = vld [vmem:[#allocation31_spill] sm:$0xff] }
 0x15a   : > { %v535_v59 = vmul.f32 %v2966_v30, %v3925_v49  ;;  %v784_v47 = vadd.f32 %v768_v33, %v749_v41  ;;  %v516_v19 = vadd.f32 %v2973_v48, %v500_v61  ;;  %v570_v43 = vmul.f32 %v2976_v23, %v3895_v37  ;;  %v3927_v27 = vld [vmem:[#allocation19_spill] sm:$0xff] }
 0x15b   : > { %v1250_v32 = vadd.f32 %v1234_v38, %v1215_v6  ;;  %v1363_v7 = vmul.f32 %v3073_v15, %v3926_v2  ;;  %v1017_v36 = vadd.f32 %v1001_v0, %v982_v58  ;;  %v1095_v4 = vmul.f32 %v3067_v5, %v3927_v27  ;;  %v481_v16 = vld [vmem:[#allocation2 + $0x108] sm:$0xff] }
 0x15c   : > { %v897_v20 = vmul.f32 %v3001_v54, %v3840_v46  ;;  %v819_v49 = vadd.f32 %v803_v3, %v784_v47  ;;  %v551_v38 = vadd.f32 %v535_v59, %v516_v19  ;;  %v605_v33 = vmul.f32 %v2991_v45, %v3163_v57  ;;  %v3928_v41 = vld [vmem:[#allocation51_spill] sm:$0xff] }
 0x15d   : > { %v1309_v1 = vadd.f32 %v1293_v21, %v1250_v32  ;;  %v1398_v37 = vmul.f32 %v3087_v62, %v3165_v9  ;;  %v1052_v6 = vadd.f32 %v1036_v39, %v1017_v36  ;;  %v1130_v0 = vmul.f32 %v3079_v11, %v3928_v41  ;;  %v3287_v58 = vld [vmem:[#allocation2 + $0xe4] sm:$0xff]  ;;  %v3929_v32 = vld [vmem:[#allocation29_spill] sm:$0xff] }
 0x15e   : > { %v932_v61 = vmul.f32 %v3015_v35, %v2888_v29  ;;  %v854_v27 = vadd.f32 %v838_v53, %v819_v49  ;;  %v586_v21 = vadd.f32 %v570_v43, %v551_v38  ;;  %v640_v3 = vmul.f32 %v3005_v51, %v481_v16  ;;  %v3296_v36 = vld [vmem:[#allocation2 + $0xf3] sm:$0xff] }
 0x15f   : > { %v1344_v46 = vadd.f32 %v1328_v44, %v1309_v1  ;;  %v1433_v57 = vmul.f32 %v3101_v31, %v3287_v58  ;;  %v1111_v59 = vadd.f32 %v1095_v4, %v1052_v6  ;;  %v1165_v39 = vmul.f32 %v3095_v50, %v3027_v8  ;;  %3930 = vst [vmem:[#allocation33_spill] sm:$0xff] %v3296_v36  ;;  %v3931_v1 = vld [vmem:[#allocation35_spill] sm:$0xff]  ;;  %v3932_v16 = vld [vmem:[#allocation18_spill] sm:$0xff] }
 0x160   : > { %v967_v47 = vmul.f32 %v3029_v10, %v3929_v32  ;;  %v913_v29 = vadd.f32 %v897_v20, %v854_v27  ;;  %v621_v41 = vadd.f32 %v605_v33, %v586_v21  ;;  %v699_v44 = vmul.f32 %v3019_v12, %v3931_v1  ;;  %v3933_v49 = vld [vmem:[#allocation38_spill] sm:$0xff] }
 0x161   : > { %v1379_v19 = vadd.f32 %v1363_v7, %v1344_v46  ;;  %v1146_v53 = vadd.f32 %v1130_v0, %v1111_v59  ;;  %v1200_v43 = vmul.f32 %v3109_v22, %v3932_v16  ;;  %v1235_v4 = vmul.f32 %v3115_v17, %v3296_v36  ;;  %v3306_v32 = vld [vmem:[#allocation2 + $0xfa] sm:$0xff]  ;;  %v3935_v0 = vld [vmem:[#allocation21_spill] sm:$0xff]  ;;  %v3936_v59 = vld [vmem:[#allocation39_spill] sm:$0xff] }
 0x162   : > { %v1002_v38 = vmul.f32 %v3041_v52, %v3933_v49  ;;  %3934 = vst [vmem:[#allocation54_spill] sm:$0xff] %v3306_v32  ;;  %v948_v7 = vadd.f32 %v932_v61, %v913_v29  ;;  %v656_v20 = vadd.f32 %v640_v3, %v621_v41  ;;  %v734_v33 = vmul.f32 %v2946_v13, %v3900_v63  ;;  %v3937_v49 = vld [vmem:[#allocation60_spill] sm:$0xff]  ;;  %v3938_v3 = vld [vmem:[#allocation34_spill] sm:$0xff]  ;;  %v3940_v16 = vld [vmem:[#allocation37_spill] sm:$0xff] }
 0x163   : > { %v1414_v6 = vadd.f32 %v1398_v37, %v1379_v19  ;;  %v1181_v46 = vadd.f32 %v1165_v39, %v1146_v53  ;;  %v1294_v27 = vmul.f32 %v3121_v55, %v3935_v0  ;;  %v1037_v21 = vmul.f32 %v3047_v18, %v3306_v32  ;;  %v680_v61 = vld [vmem:[#allocation2 + $0x109] sm:$0xff] }
 0x164   : > { %v501_v1 = vmul.f32 %v2958_v26, %v3936_v59  ;;  %v983_v37 = vadd.f32 %v967_v47, %v948_v7  ;;  %v715_v19 = vadd.f32 %v699_v44, %v656_v20  ;;  %v769_v29 = vmul.f32 %v2954_v25, %v3937_v49  ;;  %v3939_v53 = vld [vmem:[#allocation32_spill] sm:$0xff]  ;;  %v3941_v47 = vld [vmem:[#allocation55_spill] sm:$0xff]  ;;  %v3943_v20 = vld [vmem:[#allocation42_spill] sm:$0xff] }
 0x165   : > { %v1449_v36 = vadd.f32 %v1433_v57, %v1414_v6  ;;  %v1216_v41 = vadd.f32 %v1200_v43, %v1181_v46  ;;  %v536_v39 = vmul.f32 %v2966_v30, %v3938_v3  ;;  %v571_v0 = vmul.f32 %v2976_v23, %v3939_v53  ;;  %v482_v49 = vld [vmem:[#allocation2 + $0x110] sm:$0xff] }
 0x166   : > { %v517_v63 = vadd.f32 %v2973_v48, %v501_v1  ;;  %v1018_v32 = vadd.f32 %v1002_v38, %v983_v37  ;;  %v1096_v26 = vmul.f32 %v3067_v5, %v3940_v16  ;;  %v750_v57 = vadd.f32 %v734_v33, %v715_v19  ;;  %v3942_v6 = vld [vmem:[#allocation25_spill] sm:$0xff]  ;;  %v3944_v33 = vld [vmem:[#allocation26_spill] sm:$0xff] }
 0x167   : > { %1465 = vst [vmem:[%s2154_s25 + $0x58] sm:$0xff] %v1449_v36  ;;  %v804_v44 = vmul.f32 %v2962_v56, %v3941_v47  ;;  %v1251_v43 = vadd.f32 %v1235_v4, %v1216_v41  ;;  %v1329_v48 = vmul.f32 %v3058_v14, %v3942_v6  ;;  %v606_v30 = vmul.f32 %v2991_v45, %v3943_v20  ;;  %v3346_v3 = vld [vmem:[#allocation2 + $0xf4] sm:$0xff] }
 0x168   : > { %v552_v7 = vadd.f32 %v536_v39, %v517_v63  ;;  %v1053_v46 = vadd.f32 %v1037_v21, %v1018_v32  ;;  %v1131_v23 = vmul.f32 %v3079_v11, %v3914_v42  ;;  %v785_v36 = vadd.f32 %v769_v29, %v750_v57  ;;  %v3945_v21 = vld [vmem:[#allocation52_spill] sm:$0xff] }
 0x169   : > { %v839_v16 = vmul.f32 %v2987_v34, %v680_v61  ;;  %v1310_v38 = vadd.f32 %v1294_v27, %v1251_v43  ;;  %v1364_v59 = vmul.f32 %v3073_v15, %v3944_v33  ;;  %v641_v4 = vmul.f32 %v3005_v51, %v482_v49  ;;  %v3946_v27 = vld [vmem:[#allocation50_spill] sm:$0xff] }
 0x16a   : > { %v587_v1 = vadd.f32 %v571_v0, %v552_v7  ;;  %v1112_v37 = vadd.f32 %v1096_v26, %v1053_v46  ;;  %v1166_v19 = vmul.f32 %v3095_v50, %v3918_v60  ;;  %v820_v41 = vadd.f32 %v804_v44, %v785_v36  ;;  %v3947_v51 = vld [vmem:[#allocation62_spill] sm:$0xff]  ;;  %v3948_v26 = vld [vmem:[#allocation57_spill] sm:$0xff]  ;;  %v879_v46 = vld [vmem:[#allocation2 + $0x10a] sm:$0xff] }
 0x16b   : > { %v898_v45 = vmul.f32 %v3001_v54, %v3916_v28  ;;  %v1345_v32 = vadd.f32 %v1329_v48, %v1310_v38  ;;  %v1399_v29 = vmul.f32 %v3087_v62, %v3945_v21  ;;  %v700_v63 = vmul.f32 %v3019_v12, %v3946_v27  ;;  %v3354_v44 = vld [vmem:[#allocation2 + $0xfb] sm:$0xff] }
 0x16c   : > { %v622_v61 = vadd.f32 %v606_v30, %v587_v1  ;;  %v1147_v39 = vadd.f32 %v1131_v23, %v1112_v37  ;;  %v1201_v53 = vmul.f32 %v3109_v22, %v3947_v51  ;;  %v855_v0 = vadd.f32 %v839_v16, %v820_v41  ;;  %v3949_v36 = vld [vmem:[#allocation47_spill] sm:$0xff]  ;;  %v681_v37 = vld [vmem:[#allocation2 + $0x111] sm:$0xff] }
 0x16d   : > { %v933_v57 = vmul.f32 %v3015_v35, %v3948_v26  ;;  %v1380_v47 = vadd.f32 %v1364_v59, %v1345_v32  ;;  %v1434_v28 = vmul.f32 %v3101_v31, %v3346_v3  ;;  %v735_v12 = vmul.f32 %v2946_v13, %v3892_v40  ;;  %v3950_v59 = vld [vmem:[#allocation41_spill] sm:$0xff]  ;;  %v3953_v26 = vld [vmem:[#allocation51_spill] sm:$0xff] }
 0x16e   : > { %v657_v49 = vadd.f32 %v641_v4, %v622_v61  ;;  %v1182_v43 = vadd.f32 %v1166_v19, %v1147_v39  ;;  %v1236_v48 = vmul.f32 %v3115_v17, %v3354_v44  ;;  %v914_v7 = vadd.f32 %v898_v45, %v855_v0  ;;  %v3951_v40 = vld [vmem:[#allocation61_spill] sm:$0xff]  ;;  %v3952_v45 = vld [vmem:[#allocation40_spill] sm:$0xff] }
 0x16f   : > { %v968_v20 = vmul.f32 %v3029_v10, %v3921_v24  ;;  %v1415_v30 = vadd.f32 %v1399_v29, %v1380_v47  ;;  %v770_v16 = vmul.f32 %v2954_v25, %v3949_v36  ;;  %v1295_v1 = vmul.f32 %v3121_v55, %v3950_v59  ;;  %v3954_v47 = vld [vmem:[#allocation22_spill] sm:$0xff] }
 0x170   : > { %v716_v23 = vadd.f32 %v700_v63, %v657_v49  ;;  %v1217_v38 = vadd.f32 %v1201_v53, %v1182_v43  ;;  %v949_v13 = vadd.f32 %v933_v57, %v914_v7  ;;  %v1003_v4 = vmul.f32 %v3041_v52, %v3951_v40 }
 0x171   : > { %v1450_v19 = vadd.f32 %v1434_v28, %v1415_v30  ;;  %v805_v24 = vmul.f32 %v2962_v56, %v3952_v45  ;;  %v1330_v29 = vmul.f32 %v3058_v14, %v3926_v2  ;;  %v1038_v25 = vmul.f32 %v3047_v18, %v879_v46 }
 0x172   : > { %v751_v41 = vadd.f32 %v735_v12, %v716_v23  ;;  %v1252_v32 = vadd.f32 %v1236_v48, %v1217_v38  ;;  %v984_v61 = vadd.f32 %v968_v20, %v949_v13  ;;  %v840_v63 = vmul.f32 %v2987_v34, %v681_v37  ;;  %v1276_v48 = vld [vmem:[#allocation2 + $0xfc] sm:$0xff]  ;;  %v3955_v20 = vld [vmem:[#allocation29_spill] sm:$0xff] }
 0x173   : > { %1466 = vst [vmem:[%s2154_s25 + $0x60] sm:$0xff] %v1450_v19  ;;  %v1365_v53 = vmul.f32 %v3073_v15, %v3165_v9  ;;  %v1097_v57 = vmul.f32 %v3067_v5, %v3953_v26  ;;  %v899_v28 = vmul.f32 %v3001_v54, %v3954_v47  ;;  %v1400_v12 = vmul.f32 %v3087_v62, %v3287_v58  ;;  %v1078_v38 = vld [vmem:[#allocation2 + $0x10b] sm:$0xff] }
 0x174   : > { %v786_v27 = vadd.f32 %v770_v16, %v751_v41  ;;  %v1311_v39 = vadd.f32 %v1295_v1, %v1252_v32  ;;  %v1019_v0 = vadd.f32 %v1003_v4, %v984_v61  ;;  %v1132_v34 = vmul.f32 %v3079_v11, %v3027_v8  ;;  %v3956_v16 = vld [vmem:[#allocation18_spill] sm:$0xff]  ;;  %v3958_v4 = vld [vmem:[#allocation33_spill] sm:$0xff] }
 0x175   : > { %v934_v30 = vmul.f32 %v3015_v35, %v3955_v20  ;;  %v1435_v23 = vmul.f32 %v3101_v31, %v1276_v48  ;;  %v1167_v54 = vmul.f32 %v3095_v50, %v3956_v16  ;;  %v3957_v1 = vld [vmem:[#allocation38_spill] sm:$0xff]  ;;  %v1202_v37 = vmul.f32 %v3109_v22, %v3958_v4  ;;  %v880_v19 = vld [vmem:[#allocation2 + $0x112] sm:$0xff] }
 0x176   : > { %v821_v56 = vadd.f32 %v805_v24, %v786_v27  ;;  %v1346_v49 = vadd.f32 %v1330_v29, %v1311_v39  ;;  %v1054_v43 = vadd.f32 %v1038_v25, %v1019_v0  ;;  %v969_v13 = vmul.f32 %v3029_v10, %v3957_v1  ;;  %v3959_v41 = vld [vmem:[#allocation54_spill] sm:$0xff] }
 0x177   : > { %v1004_v45 = vmul.f32 %v3041_v52, %v3959_v41  ;;  %v1237_v29 = vmul.f32 %v3115_v17, %v1078_v38  ;;  %v1039_v25 = vmul.f32 %v3047_v18, %v880_v19  ;;  %v1296_v10 = vmul.f32 %v3121_v55, %v3942_v6 }
 0x178   : > { %v856_v7 = vadd.f32 %v840_v63, %v821_v56  ;;  %v1381_v46 = vadd.f32 %v1365_v53, %v1346_v49  ;;  %v1113_v36 = vadd.f32 %v1097_v57, %v1054_v43  ;;  %v1098_v39 = vmul.f32 %v3067_v5, %v3914_v42  ;;  %v1277_v56 = vld [vmem:[#allocation2 + $0x10c] sm:$0xff] }
 0x179   : > { %v1331_v52 = vmul.f32 %v3058_v14, %v3944_v33  ;;  %v1133_v26 = vmul.f32 %v3079_v11, %v3918_v60  ;;  %v1366_v57 = vmul.f32 %v3073_v15, %v3945_v21  ;;  %v1168_v47 = vmul.f32 %v3095_v50, %v3947_v51  ;;  %v1079_v42 = vld [vmem:[#allocation2 + $0x113] sm:$0xff] }
 0x17a   : > { %v915_v59 = vadd.f32 %v899_v28, %v856_v7  ;;  %v1416_v40 = vadd.f32 %v1400_v12, %v1381_v46  ;;  %v1148_v8 = vadd.f32 %v1132_v34, %v1113_v36  ;;  %v1401_v5 = vmul.f32 %v3087_v62, %v3346_v3  ;;  %v1278_v7 = vld [vmem:[#allocation2 + $0x114] sm:$0xff] }
 0x17b   : > { %v1203_v33 = vmul.f32 %v3109_v22, %v3354_v44  ;;  %v1436_v60 = vmul.f32 %v3101_v31, %v1277_v56  ;;  %v1238_v12 = vmul.f32 %v3115_v17, %v1079_v42  ;;  %v1297_v3 = vmul.f32 %v3121_v55, %v3926_v2 }
 0x17c   : > { %v950_v35 = vadd.f32 %v934_v30, %v915_v59  ;;  %v1451_v24 = vadd.f32 %v1435_v23, %v1416_v40  ;;  %v1183_v32 = vadd.f32 %v1167_v54, %v1148_v8  ;;  %v1332_v22 = vmul.f32 %v3058_v14, %v3165_v9 }
 0x17d   : > { %v1367_v17 = vmul.f32 %v3073_v15, %v3287_v58  ;;  %v1402_v55 = vmul.f32 %v3087_v62, %v1276_v48  ;;  %v1437_v14 = vmul.f32 %v3101_v31, %v1278_v7 }
 0x17e   : > { %v985_v61 = vadd.f32 %v969_v13, %v950_v35  ;;  %1467 = vst [vmem:[%s2154_s25 + $0x68] sm:$0xff] %v1451_v24  ;;  %v1218_v27 = vadd.f32 %v1202_v37, %v1183_v32 }
 0x180   : > { %v1020_v63 = vadd.f32 %v1004_v45, %v985_v61  ;;  %v1253_v53 = vadd.f32 %v1237_v29, %v1218_v27 }
 0x182   : > { %v1055_v0 = vadd.f32 %v1039_v25, %v1020_v63  ;;  %v1312_v18 = vadd.f32 %v1296_v10, %v1253_v53 }
 0x184   : > { %v1114_v6 = vadd.f32 %v1098_v39, %v1055_v0  ;;  %v1347_v28 = vadd.f32 %v1331_v52, %v1312_v18 }
 0x186   : > { %v1149_v49 = vadd.f32 %v1133_v26, %v1114_v6  ;;  %v1382_v11 = vadd.f32 %v1366_v57, %v1347_v28 }
 0x188   : > { %v1184_v21 = vadd.f32 %v1168_v47, %v1149_v49  ;;  %v1417_v43 = vadd.f32 %v1401_v5, %v1382_v11 }
 0x18a   : > { %v1219_v50 = vadd.f32 %v1203_v33, %v1184_v21  ;;  %v1452_v51 = vadd.f32 %v1436_v60, %v1417_v43 }
 0x18c   : > { %v1254_v34 = vadd.f32 %v1238_v12, %v1219_v50  ;;  %1468 = vst [vmem:[%s2154_s25 + $0x70] sm:$0xff] %v1452_v51 }
 0x18e   : > { %v1313_v44 = vadd.f32 %v1297_v3, %v1254_v34 }
 0x190   : > { %v1348_v20 = vadd.f32 %v1332_v22, %v1313_v44 }
 0x192   : > { %v1383_v2 = vadd.f32 %v1367_v17, %v1348_v20 }
 0x194   : > { %v1418_v9 = vadd.f32 %v1402_v55, %v1383_v2 }
 0x196   : > { %v1453_v30 = vadd.f32 %v1437_v14, %v1418_v9 }
 0x198   : > { %1469 = vst [vmem:[%s2154_s25 + $0x78] sm:$0xff] %v1453_v30 }
 0x199   : > { %1879 = shalt.err (!%p1876_p13)
}
 0x19a   : > { %s1988_s3 = smov 128   ;;  %s1989_s25 = smov 8  }
 0x19b   : > { %1624 = dma.vmem_to_hbm [thread:$0]  (%p2080_p6), %s1487_s26, 2048, %s1489_s28, %s1471_s29, %s1988_s3, %s1988_s3, %s1989_s25  }
 0x19c PF: > { %s3962_s6 = sld [smem:[#allocation12_spill]]  ;;  %p1641_p1 = scmp.ge.s32.totalorder %s1978_s22, 2 }
 0x19e   : > { %p1635_p4 = pnand %p1641_p1, %p2086_p10 }
 0x1a0   : > { %p1636_p11 = pneg %p1635_p4 }
 0x1a2   : > { %s1503_s20 = sand.u32 1, %s3962_s6  }
 0x1a3   : > { %s1504_s18 = scalar_lea.sflag [#allocation5], %s1503_s20 }
 0x1a4   : > { %1933 = dma.done.wait (%p1636_p11), %s1504_s18, 2048  }
 0x1a5   : > { %1935 = vsyncadd (%p1636_p11), %s1504_s18, 4294965248  ;;  %s20_s22 = sadd.s32 1, %s1978_s22   ;;  %s3964_s18 = sld [smem:[#allocation13_spill]] }
 0x1a6   : > { %p17_p0 = scmp.ge.s32.totalorder %s20_s22, 6   ;;  %s3965_s20 = sld [smem:[#allocation16_spill]] }
 0x1a7   : > { %s3966_s10 = sld [smem:[#allocation17_spill]]  ;;  %s3967_s12 = smov %s1942_s13 }
 0x1a8   : > { %s3968_s13 = smov %s1946_s14  ;;  %s3969_s14 = smov %s2128_s1 }
 0x1a9   : > { %s3970_s15 = smov %s1954_s16  ;;  %s3971_s16 = smov %s1958_s17 }
 0x1aa   : > { %s3972_s17 = smov %s2125_s9  ;;  %s3973_s19 = smov %s1974_s21 }
 0x1ab   :  { %19 = sbr.rel (!%p17_p0) target bundleno = 13 (0xd), region = 121 }
 0x1ad   : > { %s3974_s21 = smov %s3966_s10 }
 0x1b0   :  { %1510 = vsyncpa [#allocation4], 1 }
 0x1b1   :  { %1512 = vsyncpa [#allocation4 + $0x1], 1 }
 0x1b2   :  { %1513 = vsyncpa [#allocation7], 1 }
 0x1b3   :  { %1514 = vsyncpa [#allocation5], 1 }
 0x1b4   :  { %1516 = vsyncpa [#allocation5 + $0x1], 1 }

</bundles_post_ra>
